<compile_context>
chip_gen: v7x
topology: tpu7x:2x2x1
jax: 0.10.0
libtpu: 0.0.40
codegen_flags: <defaults>
</compile_context>

<pallas_src>
import functools

import jax
import jax.numpy as jnp
from jax.experimental import pallas as pl
from jax.experimental.pallas import tpu as pltpu

_VMEM = pltpu.MemorySpace.VMEM


def _vmem_specs(n):
    return [pl.BlockSpec(memory_space=_VMEM) for _ in range(n)]


# ----------------------------- fused kernel --------------------------------

def _mp_fused_kernel(feats_ref, adj_ref,
                     wt_ref, bt_ref,
                     wg_ref, bg_ref, ag_ref,
                     wp1_ref, bp1_ref, ap_ref, wp2_ref, bp2_ref,
                     z_out_ref, loss_ref,
                     *, P, stu_idx, hp):
    f32 = jnp.float32
    bf16 = jnp.bfloat16
    n_nodes = feats_ref.shape[0]

    # ---- h = ELU(feats @ Wt + bt)   (ELU alpha=1; exp only on the <=0 branch) ----
    # feats / Wt arrive bf16; accumulate in f32 on the MXU.
    y = jnp.dot(feats_ref[...], wt_ref[...], preferred_element_type=f32) + bt_ref[...]
    h = jnp.where(y > 0, y, jnp.exp(jnp.minimum(y, 0.0)) - 1.0)

    # ---- all P view projections in one wide MXU matmul: h @ [Wg_0 | .. | Wg_{P-1}] ----
    hw_all = jnp.dot(h.astype(bf16), wg_ref[...], preferred_element_type=f32)
    hw_all_b = hw_all.astype(bf16)          # cast once; reused by every adj matmul

    bg = bg_ref[...]          # (P, hp) f32
    ag = ag_ref[...]          # (P, hp) f32

    def gcn_view(i):
        # z_i = PReLU(adj_i @ hw_i + bg_i)    -- exactly the reference GCN module
        out = jnp.dot(adj_ref[i], hw_all_b[:, i * hp:(i + 1) * hp],
                      preferred_element_type=f32) + bg[i:i + 1, :]
        return jnp.where(out > 0, out, ag[i:i + 1, :] * out)

    # ---- student view first: Linear -> BN(train batch stats) -> PReLU -> Linear ----
    z_stu = gcn_view(stu_idx)
    t = jnp.dot(z_stu.astype(bf16), wp1_ref[...],
                preferred_element_type=f32) + bp1_ref[...]
    mean = jnp.mean(t, axis=0, keepdims=True)
    var = jnp.mean((t - mean) ** 2, axis=0, keepdims=True)   # biased, as BN normalizes
    t = (t - mean) * jax.lax.rsqrt(var + 1e-5)
    t = jnp.where(t > 0, t, ap_ref[...] * t)
    v_pred = jnp.dot(t.astype(bf16), wp2_ref[...],
                     preferred_element_type=f32) + bp2_ref[...]

    # F.normalize clamps the norm at 1e-12  ->  rsqrt(max(sumsq, 1e-24)); pn computed once.
    pn = v_pred * jax.lax.rsqrt(
        jnp.maximum(jnp.sum(v_pred * v_pred, axis=-1, keepdims=True), 1e-24))

    # ---- teacher views: fold into the view-mean and the BYOL loss on the fly ----
    # (keeps only ~2 (N, hp) f32 intermediates live instead of a list of P of them)
    z_sum = z_stu
    cos_acc = jnp.zeros((1, 1), f32)
    for i in range(P):
        if i == stu_idx:
            continue
        z_i = gcn_view(i)
        z_sum = z_sum + z_i
        tn = z_i * jax.lax.rsqrt(
            jnp.maximum(jnp.sum(z_i * z_i, axis=-1, keepdims=True), 1e-24))
        cos_acc = cos_acc + jnp.sum(jnp.sum(pn * tn, axis=-1, keepdims=True),
                                    axis=0, keepdims=True)

    z_out_ref[...] = z_sum * (1.0 / P)        # agg == 0: mean over all P views
    n_teachers = P - 1
    # mean_i mean_n (2 - 2*cos)  ==  2 - 2 * mean(cos) over all (teacher, node) pairs
    loss_ref[...] = 2.0 - 2.0 * cos_acc * (1.0 / (n_nodes * n_teachers))


# ----------------------------- wrapper --------------------------------------

def mp_forward(feats0, adj_stack, params, stu_idx, P, hidden):
    N = feats0.shape[0]
    f0p = params["Wt"].shape[0]                     # padded input width (128)
    hp = params["Wt"].shape[1]                      # padded hidden width (128)

    # lane-dense, bf16-at-rest operands: pad feats to 128 lanes and cast the two
    # big inputs (features + adjacency stack) to bf16 ONCE, outside the kernel.
    feats = jnp.pad(feats0, ((0, 0), (0, f0p - feats0.shape[1]))).astype(jnp.bfloat16)
    adj = adj_stack.astype(jnp.bfloat16)

    kernel = functools.partial(_mp_fused_kernel, P=P, stu_idx=stu_idx, hp=hp)
    z_pad, loss = pl.pallas_call(
        kernel,
        out_shape=(jax.ShapeDtypeStruct((N, hp), jnp.float32),
                   jax.ShapeDtypeStruct((1, 1), jnp.float32)),
        in_specs=_vmem_specs(12),
        out_specs=(pl.BlockSpec(memory_space=_VMEM),
                   pl.BlockSpec(memory_space=_VMEM)),
        # NOTE: no vmem_limit_bytes override -- the resident footprint is a few
        # hundred KiB, well under the scoped default (and 64 MiB would be 100%
        # of a v7x TensorCore's physical VMEM).
    )(feats, adj,
      params["Wt"], params["bt"],
      params["Wg_all"], params["bg"], params["ag"],
      params["Wp1"], params["bp1"], params["ap"], params["Wp2"], params["bp2"])
    # padded channels are exactly zero; slice off.  (If downstream only needs the
    # real channels at reduced precision, z_out could be emitted as bf16 to halve
    # the writeback; kept f32 here to match the reference dtype.)
    return z_pad[:, :hidden], loss[0, 0]


# ----------------------------- parameter init ------------------------------

def _xavier_normal(key, shape, gain=1.414):
    fan_in, fan_out = shape
    std = gain * (2.0 / (fan_in + fan_out)) ** 0.5
    return std * jax.random.normal(key, shape, jnp.float32)


def _xavier_uniform(key, shape, gain=1.0):
    fan_in, fan_out = shape
    limit = gain * (6.0 / (fan_in + fan_out)) ** 0.5
    return jax.random.uniform(key, shape, jnp.float32, -limit, limit)


def _pad2(x, rows, cols):
    return jnp.pad(x, ((0, rows - x.shape[0]), (0, cols - x.shape[1])))


def _pad_row(vec, width):
    v = vec.reshape(1, -1)
    return jnp.pad(v, ((0, 0), (0, width - v.shape[1])))


def init_params(key, f0, hidden, pred_hid, P, pad=128):
    f0p = max(pad, f0)           # padded input width
    hp = max(pad, hidden)        # padded hidden width
    pp = max(pad, pred_hid)      # padded predictor hidden width
    keys = jax.random.split(key, 4 + P)

    wt = _xavier_normal(keys[0], (f0, hidden))
    wg = [_xavier_normal(keys[1 + i], (hidden, hidden)) for i in range(P)]
    wp1 = _xavier_uniform(keys[1 + P], (hidden, pred_hid))
    wp2 = _xavier_uniform(keys[2 + P], (pred_hid, hidden))

    bf16 = jnp.bfloat16
    params = {
        # target feature transform (Linear(f0 -> hidden), xavier_normal gain 1.414)
        # weight matrices are stored bf16 at rest (f32 MXU accumulation in-kernel)
        "Wt": _pad2(wt, f0p, hp).astype(bf16),
        "bt": _pad_row(0.01 * jnp.ones((hidden,), jnp.float32), hp),
        # GCN encoders: Linear(hidden -> hidden, no bias), GCN bias 0, PReLU a=0.25
        # concatenated along the output dim so h @ Wg_all does all P views at once
        "Wg_all": jnp.concatenate([_pad2(w, hp, hp) for w in wg], axis=1).astype(bf16),
        "bg": jnp.zeros((P, hp), jnp.float32),
        "ag": jnp.full((P, hp), 0.25, jnp.float32),
        # student predictor: Linear(hidden->pred_hid), BN, PReLU, Linear(pred_hid->hidden)
        "Wp1": _pad2(wp1, hp, pp).astype(bf16),
        "bp1": _pad_row(jnp.full((pred_hid,), 0.01, jnp.float32), pp),
        "ap": jnp.full((1, pp), 0.25, jnp.float32),
        "Wp2": _pad2(wp2, pp, hp).astype(bf16),
        "bp2": _pad_row(jnp.full((hidden,), 0.01, jnp.float32), hp),
    }
    return params


# ----------------------------- main -----------------------------------------

if __name__ == "__main__":
    N = 64          # number of nodes
    F0 = 32         # feats_dim_list[0]
    HIDDEN = 32     # hidden_dim
    PRED_HID = 64   # pred_hid
    P = 3           # number of meta-paths / encoders
    mps_num = [3, 5, 2]
    stu_idx = mps_num.index(max(mps_num, key=abs))  # -> 1

    key = jax.random.PRNGKey(0)
    k_feat, k_adj, k_param = jax.random.split(key, 3)

    feats0 = jax.random.normal(k_feat, (N, F0), jnp.float32)

    # dense, row-normalized random adjacencies (stand-in for sparse meta-path graphs)
    adj_keys = jax.random.split(k_adj, P)
    mps = []
    for i in range(P):
        a = jax.random.uniform(adj_keys[i], (N, N), jnp.float32)
        a = (a > 0.8).astype(jnp.float32) + jnp.eye(N, dtype=jnp.float32)
        a = a / jnp.sum(a, axis=1, keepdims=True)
        mps.append(a)
    adj_stack = jnp.stack(mps, axis=0)            # (P, N, N)

    params = init_params(k_param, F0, HIDDEN, PRED_HID, P)

    z_out, loss_final = mp_forward(feats0, adj_stack, params, stu_idx, P, HIDDEN)
    jax.block_until_ready(z_out)
    jax.block_until_ready(loss_final)

    assert z_out.shape == (N, HIDDEN)
    assert loss_final.shape == ()
    print("KERNEL_OK")
</pallas_src>

<mosaic_0001>
module attributes {stable_mosaic.version = 11 : i64} {
  func.func @_mp_fused_kernel(%arg0: memref<64x128xbf16, #tpu.memory_space<vmem>>, %arg1: memref<3x64x64xbf16, #tpu.memory_space<vmem>>, %arg2: memref<128x128xbf16, #tpu.memory_space<vmem>>, %arg3: memref<1x128xf32, #tpu.memory_space<vmem>>, %arg4: memref<128x384xbf16, #tpu.memory_space<vmem>>, %arg5: memref<3x128xf32, #tpu.memory_space<vmem>>, %arg6: memref<3x128xf32, #tpu.memory_space<vmem>>, %arg7: memref<128x128xbf16, #tpu.memory_space<vmem>>, %arg8: memref<1x128xf32, #tpu.memory_space<vmem>>, %arg9: memref<1x128xf32, #tpu.memory_space<vmem>>, %arg10: memref<128x128xbf16, #tpu.memory_space<vmem>>, %arg11: memref<1x128xf32, #tpu.memory_space<vmem>>, %arg12: memref<64x128xf32, #tpu.memory_space<vmem>>, %arg13: memref<1x1xf32, #tpu.memory_space<vmem>>) attributes {dimension_semantics = [], scalar_prefetch = 0 : i64, scratch_operands = 0 : i64, tpu.core_type = #tpu.core_type<tc>} {
    %c0 = arith.constant 0 : index
    %c0_0 = arith.constant 0 : index
    %0 = vector.load %arg0[%c0, %c0_0] : memref<64x128xbf16, #tpu.memory_space<vmem>>, vector<64x128xbf16>
    %c0_1 = arith.constant 0 : index
    %c0_2 = arith.constant 0 : index
    %1 = vector.load %arg2[%c0_1, %c0_2] : memref<128x128xbf16, #tpu.memory_space<vmem>>, vector<128x128xbf16>
    %cst = arith.constant dense<0.000000e+00> : vector<64x128xf32>
    %2 = tpu.matmul %0, %1, %cst {dimension_numbers = #tpu.dot_dimension_numbers<[1], [0], [0], [1], [0, 0, 1, 1], [], []>} : vector<64x128xbf16>, vector<128x128xbf16>, vector<64x128xf32> -> vector<64x128xf32>
    %c0_3 = arith.constant 0 : index
    %c0_4 = arith.constant 0 : index
    %3 = vector.load %arg3[%c0_3, %c0_4] : memref<1x128xf32, #tpu.memory_space<vmem>>, vector<1x128xf32>
    %4 = vector.broadcast %3 : vector<1x128xf32> to vector<64x128xf32>
    %5 = arith.addf %2, %4 : vector<64x128xf32>
    %cst_5 = arith.constant 0.000000e+00 : f32
    %6 = vector.broadcast %cst_5 : f32 to vector<64x128xf32>
    %7 = arith.cmpf ogt, %5, %6 : vector<64x128xf32>
    %cst_6 = arith.constant 0.000000e+00 : f32
    %8 = vector.broadcast %cst_6 : f32 to vector<64x128xf32>
    %9 = arith.minimumf %5, %8 : vector<64x128xf32>
    %10 = math.exp %9 : vector<64x128xf32>
    %cst_7 = arith.constant 1.000000e+00 : f32
    %11 = vector.broadcast %cst_7 : f32 to vector<64x128xf32>
    %12 = arith.subf %10, %11 : vector<64x128xf32>
    %13 = arith.select %7, %5, %12 : vector<64x128xi1>, vector<64x128xf32>
    %14 = arith.truncf %13 : vector<64x128xf32> to vector<64x128xbf16>
    %c0_8 = arith.constant 0 : index
    %c0_9 = arith.constant 0 : index
    %15 = vector.load %arg4[%c0_8, %c0_9] : memref<128x384xbf16, #tpu.memory_space<vmem>>, vector<128x384xbf16>
    %cst_10 = arith.constant dense<0.000000e+00> : vector<64x384xf32>
    %16 = tpu.matmul %14, %15, %cst_10 {dimension_numbers = #tpu.dot_dimension_numbers<[1], [0], [0], [1], [0, 0, 1, 1], [], []>} : vector<64x128xbf16>, vector<128x384xbf16>, vector<64x384xf32> -> vector<64x384xf32>
    %17 = arith.truncf %16 : vector<64x384xf32> to vector<64x384xbf16>
    %c0_11 = arith.constant 0 : index
    %c0_12 = arith.constant 0 : index
    %18 = vector.load %arg5[%c0_11, %c0_12] : memref<3x128xf32, #tpu.memory_space<vmem>>, vector<3x128xf32>
    %c0_13 = arith.constant 0 : index
    %c0_14 = arith.constant 0 : index
    %19 = vector.load %arg6[%c0_13, %c0_14] : memref<3x128xf32, #tpu.memory_space<vmem>>, vector<3x128xf32>
    %c1 = arith.constant 1 : index
    %c0_15 = arith.constant 0 : index
    %c0_16 = arith.constant 0 : index
    %20 = vector.load %arg1[%c1, %c0_15, %c0_16] : memref<3x64x64xbf16, #tpu.memory_space<vmem>>, vector<1x64x64xbf16>
    %21 = vector.shape_cast %20 : vector<1x64x64xbf16> to vector<64x64xbf16>
    %22 = vector.extract_strided_slice %17 {offsets = [0, 128], sizes = [64, 128], strides = [1, 1]} : vector<64x384xbf16> to vector<64x128xbf16>
    %cst_17 = arith.constant dense<0.000000e+00> : vector<64x128xf32>
    %23 = tpu.matmul %21, %22, %cst_17 {dimension_numbers = #tpu.dot_dimension_numbers<[1], [0], [0], [1], [0, 0, 1, 1], [], []>} : vector<64x64xbf16>, vector<64x128xbf16>, vector<64x128xf32> -> vector<64x128xf32>
    %24 = vector.extract_strided_slice %18 {offsets = [1, 0], sizes = [1, 128], strides = [1, 1]} : vector<3x128xf32> to vector<1x128xf32>
    %25 = vector.broadcast %24 : vector<1x128xf32> to vector<64x128xf32>
    %26 = arith.addf %23, %25 : vector<64x128xf32>
    %cst_18 = arith.constant 0.000000e+00 : f32
    %27 = vector.broadcast %cst_18 : f32 to vector<64x128xf32>
    %28 = arith.cmpf ogt, %26, %27 : vector<64x128xf32>
    %29 = vector.extract_strided_slice %19 {offsets = [1, 0], sizes = [1, 128], strides = [1, 1]} : vector<3x128xf32> to vector<1x128xf32>
    %30 = vector.broadcast %29 : vector<1x128xf32> to vector<64x128xf32>
    %31 = arith.mulf %30, %26 : vector<64x128xf32>
    %32 = arith.select %28, %26, %31 : vector<64x128xi1>, vector<64x128xf32>
    %33 = arith.truncf %32 : vector<64x128xf32> to vector<64x128xbf16>
    %c0_19 = arith.constant 0 : index
    %c0_20 = arith.constant 0 : index
    %34 = vector.load %arg7[%c0_19, %c0_20] : memref<128x128xbf16, #tpu.memory_space<vmem>>, vector<128x128xbf16>
    %cst_21 = arith.constant dense<0.000000e+00> : vector<64x128xf32>
    %35 = tpu.matmul %33, %34, %cst_21 {dimension_numbers = #tpu.dot_dimension_numbers<[1], [0], [0], [1], [0, 0, 1, 1], [], []>} : vector<64x128xbf16>, vector<128x128xbf16>, vector<64x128xf32> -> vector<64x128xf32>
    %c0_22 = arith.constant 0 : index
    %c0_23 = arith.constant 0 : index
    %36 = vector.load %arg8[%c0_22, %c0_23] : memref<1x128xf32, #tpu.memory_space<vmem>>, vector<1x128xf32>
    %37 = vector.broadcast %36 : vector<1x128xf32> to vector<64x128xf32>
    %38 = arith.addf %35, %37 : vector<64x128xf32>
    %cst_24 = arith.constant dense<0.000000e+00> : vector<128xf32>
    %39 = vector.multi_reduction <add>, %38, %cst_24 [0] : vector<64x128xf32> to vector<128xf32>
    %40 = vector.shape_cast %39 : vector<128xf32> to vector<1x128xf32>
    %cst_25 = arith.constant 6.400000e+01 : f32
    %41 = vector.broadcast %cst_25 : f32 to vector<1x128xf32>
    %42 = arith.divf %40, %41 : vector<1x128xf32>
    %43 = vector.broadcast %42 : vector<1x128xf32> to vector<64x128xf32>
    %44 = arith.subf %38, %43 : vector<64x128xf32>
    %45 = arith.mulf %44, %44 : vector<64x128xf32>
    %cst_26 = arith.constant dense<0.000000e+00> : vector<128xf32>
    %46 = vector.multi_reduction <add>, %45, %cst_26 [0] : vector<64x128xf32> to vector<128xf32>
    %47 = vector.shape_cast %46 : vector<128xf32> to vector<1x128xf32>
    %cst_27 = arith.constant 6.400000e+01 : f32
    %48 = vector.broadcast %cst_27 : f32 to vector<1x128xf32>
    %49 = arith.divf %47, %48 : vector<1x128xf32>
    %50 = vector.broadcast %42 : vector<1x128xf32> to vector<64x128xf32>
    %51 = arith.subf %38, %50 : vector<64x128xf32>
    %cst_28 = arith.constant 9.99999974E-6 : f32
    %52 = vector.broadcast %cst_28 : f32 to vector<1x128xf32>
    %53 = arith.addf %49, %52 : vector<1x128xf32>
    %54 = math.rsqrt %53 : vector<1x128xf32>
    %55 = vector.broadcast %54 : vector<1x128xf32> to vector<64x128xf32>
    %56 = arith.mulf %51, %55 : vector<64x128xf32>
    %cst_29 = arith.constant 0.000000e+00 : f32
    %57 = vector.broadcast %cst_29 : f32 to vector<64x128xf32>
    %58 = arith.cmpf ogt, %56, %57 : vector<64x128xf32>
    %c0_30 = arith.constant 0 : index
    %c0_31 = arith.constant 0 : index
    %59 = vector.load %arg9[%c0_30, %c0_31] : memref<1x128xf32, #tpu.memory_space<vmem>>, vector<1x128xf32>
    %60 = vector.broadcast %59 : vector<1x128xf32> to vector<64x128xf32>
    %61 = arith.mulf %60, %56 : vector<64x128xf32>
    %62 = arith.select %58, %56, %61 : vector<64x128xi1>, vector<64x128xf32>
    %63 = arith.truncf %62 : vector<64x128xf32> to vector<64x128xbf16>
    %c0_32 = arith.constant 0 : index
    %c0_33 = arith.constant 0 : index
    %64 = vector.load %arg10[%c0_32, %c0_33] : memref<128x128xbf16, #tpu.memory_space<vmem>>, vector<128x128xbf16>
    %cst_34 = arith.constant dense<0.000000e+00> : vector<64x128xf32>
    %65 = tpu.matmul %63, %64, %cst_34 {dimension_numbers = #tpu.dot_dimension_numbers<[1], [0], [0], [1], [0, 0, 1, 1], [], []>} : vector<64x128xbf16>, vector<128x128xbf16>, vector<64x128xf32> -> vector<64x128xf32>
    %c0_35 = arith.constant 0 : index
    %c0_36 = arith.constant 0 : index
    %66 = vector.load %arg11[%c0_35, %c0_36] : memref<1x128xf32, #tpu.memory_space<vmem>>, vector<1x128xf32>
    %67 = vector.broadcast %66 : vector<1x128xf32> to vector<64x128xf32>
    %68 = arith.addf %65, %67 : vector<64x128xf32>
    %69 = arith.mulf %68, %68 : vector<64x128xf32>
    %cst_37 = arith.constant dense<0.000000e+00> : vector<64xf32>
    %70 = vector.multi_reduction <add>, %69, %cst_37 [1] : vector<64x128xf32> to vector<64xf32>
    %71 = vector.shape_cast %70 : vector<64xf32> to vector<64x1xf32>
    %cst_38 = arith.constant 1.000000e-24 : f32
    %72 = vector.broadcast %cst_38 : f32 to vector<64x1xf32>
    %73 = arith.maximumf %71, %72 : vector<64x1xf32>
    %74 = math.rsqrt %73 : vector<64x1xf32>
    %75 = vector.broadcast %74 : vector<64x1xf32> to vector<64x128xf32>
    %76 = arith.mulf %68, %75 : vector<64x128xf32>
    %cst_39 = arith.constant 0.000000e+00 : f32
    %77 = vector.broadcast %cst_39 : f32 to vector<1x1xf32>
    %c0_40 = arith.constant 0 : index
    %c0_41 = arith.constant 0 : index
    %c0_42 = arith.constant 0 : index
    %78 = vector.load %arg1[%c0_40, %c0_41, %c0_42] : memref<3x64x64xbf16, #tpu.memory_space<vmem>>, vector<1x64x64xbf16>
    %79 = vector.shape_cast %78 : vector<1x64x64xbf16> to vector<64x64xbf16>
    %80 = vector.extract_strided_slice %17 {offsets = [0, 0], sizes = [64, 128], strides = [1, 1]} : vector<64x384xbf16> to vector<64x128xbf16>
    %cst_43 = arith.constant dense<0.000000e+00> : vector<64x128xf32>
    %81 = tpu.matmul %79, %80, %cst_43 {dimension_numbers = #tpu.dot_dimension_numbers<[1], [0], [0], [1], [0, 0, 1, 1], [], []>} : vector<64x64xbf16>, vector<64x128xbf16>, vector<64x128xf32> -> vector<64x128xf32>
    %82 = vector.extract_strided_slice %18 {offsets = [0, 0], sizes = [1, 128], strides = [1, 1]} : vector<3x128xf32> to vector<1x128xf32>
    %83 = vector.broadcast %82 : vector<1x128xf32> to vector<64x128xf32>
    %84 = arith.addf %81, %83 : vector<64x128xf32>
    %cst_44 = arith.constant 0.000000e+00 : f32
    %85 = vector.broadcast %cst_44 : f32 to vector<64x128xf32>
    %86 = arith.cmpf ogt, %84, %85 : vector<64x128xf32>
    %87 = vector.extract_strided_slice %19 {offsets = [0, 0], sizes = [1, 128], strides = [1, 1]} : vector<3x128xf32> to vector<1x128xf32>
    %88 = vector.broadcast %87 : vector<1x128xf32> to vector<64x128xf32>
    %89 = arith.mulf %88, %84 : vector<64x128xf32>
    %90 = arith.select %86, %84, %89 : vector<64x128xi1>, vector<64x128xf32>
    %91 = arith.addf %32, %90 : vector<64x128xf32>
    %92 = arith.mulf %90, %90 : vector<64x128xf32>
    %cst_45 = arith.constant dense<0.000000e+00> : vector<64xf32>
    %93 = vector.multi_reduction <add>, %92, %cst_45 [1] : vector<64x128xf32> to vector<64xf32>
    %94 = vector.shape_cast %93 : vector<64xf32> to vector<64x1xf32>
    %cst_46 = arith.constant 1.000000e-24 : f32
    %95 = vector.broadcast %cst_46 : f32 to vector<64x1xf32>
    %96 = arith.maximumf %94, %95 : vector<64x1xf32>
    %97 = math.rsqrt %96 : vector<64x1xf32>
    %98 = vector.broadcast %97 : vector<64x1xf32> to vector<64x128xf32>
    %99 = arith.mulf %90, %98 : vector<64x128xf32>
    %100 = arith.mulf %76, %99 : vector<64x128xf32>
    %cst_47 = arith.constant dense<0.000000e+00> : vector<64xf32>
    %101 = vector.multi_reduction <add>, %100, %cst_47 [1] : vector<64x128xf32> to vector<64xf32>
    %102 = vector.shape_cast %101 : vector<64xf32> to vector<64x1xf32>
    %cst_48 = arith.constant dense<0.000000e+00> : vector<1xf32>
    %103 = vector.multi_reduction <add>, %102, %cst_48 [0] : vector<64x1xf32> to vector<1xf32>
    %104 = vector.shape_cast %103 : vector<1xf32> to vector<1x1xf32>
    %105 = arith.addf %77, %104 : vector<1x1xf32>
    %c2 = arith.constant 2 : index
    %c0_49 = arith.constant 0 : index
    %c0_50 = arith.constant 0 : index
    %106 = vector.load %arg1[%c2, %c0_49, %c0_50] : memref<3x64x64xbf16, #tpu.memory_space<vmem>>, vector<1x64x64xbf16>
    %107 = vector.shape_cast %106 : vector<1x64x64xbf16> to vector<64x64xbf16>
    %108 = vector.extract_strided_slice %17 {offsets = [0, 256], sizes = [64, 128], strides = [1, 1]} : vector<64x384xbf16> to vector<64x128xbf16>
    %cst_51 = arith.constant dense<0.000000e+00> : vector<64x128xf32>
    %109 = tpu.matmul %107, %108, %cst_51 {dimension_numbers = #tpu.dot_dimension_numbers<[1], [0], [0], [1], [0, 0, 1, 1], [], []>} : vector<64x64xbf16>, vector<64x128xbf16>, vector<64x128xf32> -> vector<64x128xf32>
    %110 = vector.extract_strided_slice %18 {offsets = [2, 0], sizes = [1, 128], strides = [1, 1]} : vector<3x128xf32> to vector<1x128xf32>
    %111 = vector.broadcast %110 : vector<1x128xf32> to vector<64x128xf32>
    %112 = arith.addf %109, %111 : vector<64x128xf32>
    %cst_52 = arith.constant 0.000000e+00 : f32
    %113 = vector.broadcast %cst_52 : f32 to vector<64x128xf32>
    %114 = arith.cmpf ogt, %112, %113 : vector<64x128xf32>
    %115 = vector.extract_strided_slice %19 {offsets = [2, 0], sizes = [1, 128], strides = [1, 1]} : vector<3x128xf32> to vector<1x128xf32>
    %116 = vector.broadcast %115 : vector<1x128xf32> to vector<64x128xf32>
    %117 = arith.mulf %116, %112 : vector<64x128xf32>
    %118 = arith.select %114, %112, %117 : vector<64x128xi1>, vector<64x128xf32>
    %119 = arith.addf %91, %118 : vector<64x128xf32>
    %120 = arith.mulf %118, %118 : vector<64x128xf32>
    %cst_53 = arith.constant dense<0.000000e+00> : vector<64xf32>
    %121 = vector.multi_reduction <add>, %120, %cst_53 [1] : vector<64x128xf32> to vector<64xf32>
    %122 = vector.shape_cast %121 : vector<64xf32> to vector<64x1xf32>
    %cst_54 = arith.constant 1.000000e-24 : f32
    %123 = vector.broadcast %cst_54 : f32 to vector<64x1xf32>
    %124 = arith.maximumf %122, %123 : vector<64x1xf32>
    %125 = math.rsqrt %124 : vector<64x1xf32>
    %126 = vector.broadcast %125 : vector<64x1xf32> to vector<64x128xf32>
    %127 = arith.mulf %118, %126 : vector<64x128xf32>
    %128 = arith.mulf %76, %127 : vector<64x128xf32>
    %cst_55 = arith.constant dense<0.000000e+00> : vector<64xf32>
    %129 = vector.multi_reduction <add>, %128, %cst_55 [1] : vector<64x128xf32> to vector<64xf32>
    %130 = vector.shape_cast %129 : vector<64xf32> to vector<64x1xf32>
    %cst_56 = arith.constant dense<0.000000e+00> : vector<1xf32>
    %131 = vector.multi_reduction <add>, %130, %cst_56 [0] : vector<64x1xf32> to vector<1xf32>
    %132 = vector.shape_cast %131 : vector<1xf32> to vector<1x1xf32>
    %133 = arith.addf %105, %132 : vector<1x1xf32>
    %cst_57 = arith.constant 0.333333343 : f32
    %134 = vector.broadcast %cst_57 : f32 to vector<64x128xf32>
    %135 = arith.mulf %119, %134 : vector<64x128xf32>
    %c0_58 = arith.constant 0 : index
    %c0_59 = arith.constant 0 : index
    %136 = vector.load %arg12[%c0_58, %c0_59] : memref<64x128xf32, #tpu.memory_space<vmem>>, vector<64x128xf32>
    tpu.vector_store %arg12[%c0_58, %c0_59], %135 {strides = array<i32>} : memref<64x128xf32, #tpu.memory_space<vmem>>, vector<64x128xf32>,
    %cst_60 = arith.constant 2.000000e+00 : f32
    %137 = vector.broadcast %cst_60 : f32 to vector<1x1xf32>
    %138 = arith.mulf %137, %133 : vector<1x1xf32>
    %cst_61 = arith.constant 7.812500e-03 : f32
    %139 = vector.broadcast %cst_61 : f32 to vector<1x1xf32>
    %140 = arith.mulf %138, %139 : vector<1x1xf32>
    %cst_62 = arith.constant 2.000000e+00 : f32
    %141 = vector.broadcast %cst_62 : f32 to vector<1x1xf32>
    %142 = arith.subf %141, %140 : vector<1x1xf32>
    %c0_63 = arith.constant 0 : index
    %c0_64 = arith.constant 0 : index
    %143 = vector.load %arg13[%c0_63, %c0_64] : memref<1x1xf32, #tpu.memory_space<vmem>>, vector<1x1xf32>
    tpu.vector_store %arg13[%c0_63, %c0_64], %142 {strides = array<i32>} : memref<1x1xf32, #tpu.memory_space<vmem>>, vector<1x1xf32>,
    return
  }
}

</mosaic_0001>

<bundles_post_ra>
// kernel: tpu_custom_call.1
= control target key start
LH: loop header
LB: loop body
LE: loop exit
PB: predicated region body
PF: predicated region fallthrough
CT: control target
= control target key end

     0   :  { %19 = vsyncpa [#allocation3], 0  ;;  %s2921_s0 = inlined_call_operand.hbm [shape: bf16[64,128], index: 0, kind: input, shape index: {}]   ;;  %s2922_s1 = inlined_call_operand.hbm [shape: bf16[3,64,64], index: 1, kind: input, shape index: {}]   ;;  %s2923_s2 = inlined_call_operand.hbm [shape: bf16[128,128], index: 2, kind: input, shape index: {}]   ;;  %s2924_s3 = inlined_call_operand.vmem [shape: f32[1,128], index: 3, kind: input, shape index: {}]   ;;  %s2925_s4 = inlined_call_operand.hbm [shape: bf16[128,384], index: 4, kind: input, shape index: {}]   ;;  %s2926_s5 = inlined_call_operand.vmem [shape: f32[3,128], index: 5, kind: input, shape index: {}]   ;;  %s2927_s6 = inlined_call_operand.vmem [shape: f32[3,128], index: 6, kind: input, shape index: {}]   ;;  %s2928_s7 = inlined_call_operand.hbm [shape: bf16[128,128], index: 7, kind: input, shape index: {}]   ;;  %s2929_s8 = inlined_call_operand.vmem [shape: f32[1,128], index: 8, kind: input, shape index: {}]   ;;  %s2930_s9 = inlined_call_operand.vmem [shape: f32[1,128], index: 9, kind: input, shape index: {}]   ;;  %s2931_s10 = inlined_call_operand.hbm [shape: bf16[128,128], index: 10, kind: input, shape index: {}]   ;;  %s2932_s11 = inlined_call_operand.vmem [shape: f32[1,128], index: 11, kind: input, shape index: {}]   ;;  %s2933_s12 = inlined_call_operand.hbm [shape: f32[64,128], index: 12, kind: output, shape index: {0}]   ;;  %s2934_s13 = inlined_call_operand.hbm [shape: f32[1,1], index: 13, kind: output, shape index: {1}]  }
   0x1   :  { %20 = vsyncpa [#allocation6], 0 }
   0x2   :  { %21 = vsyncpa [#allocation9], 0 }
   0x3   :  { %22 = vsyncpa [#allocation12], 0 }
   0x4   :  { %23 = vsyncpa [#allocation4], 0 }
   0x5   :  { %24 = vsyncpa [#allocation15], 0  ;;  %s2376_s25 = smov [#allocation5]   ;;  %s2377_s27 = smov [#allocation8]  }
   0x6   :  { %s42_s26 = sshll.u32 %s2376_s25, 4  ;;  %s68_s28 = sshll.u32 %s2377_s27, 4  ;;  %s43_s26 = int_to_ptr.vmem [resolvable:$true] %s42_s26  ;;  %s2461_s28 = int_to_ptr.vmem [resolvable:$true] %s68_s28 }
   0x7   :  { %s2188_s14 = scalar_lea.hbm %s2922_s1, 1536 }
   0x8   :  { %p2189_p0 = scmp.ne.s32.totalorder %s2922_s1, %s2188_s14  ;;  %p2192_p1 = scmp.lt.u32.totalorder %s2188_s14, %s2922_s1 }
   0xa   :  { %p2194_p2 = pnand %p2192_p1, %p2189_p0 }
   0xc   :  { %2197 = shalt.err (!%p2194_p2)
}
   0xd   :  { %s2198_s19 = scalar_lea.vmem %s43_s26, 1536  ;;  %p2203_p4 = scmp.lt.s32.totalorder %s43_s26, %s43_s26 }
   0xe   :  { %p2199_p3 = scmp.ne.s32.totalorder %s43_s26, %s2198_s19  ;;  %p2204_p5 = scmp.lt.s32.totalorder %s2198_s19, %s2198_s19 }
  0x10   :  { %p2205_p6 = por %p2204_p5, %p2203_p4 }
  0x12   :  { %p2206_p7 = pnand %p2205_p6, %p2199_p3 }
  0x14   :  { %2209 = shalt.err (!%p2206_p7)
}
  0x15   :  { %s2378_s20 = smov 64   ;;  %s2379_s21 = smov 4  }
  0x16   :  { %48 = dma.hbm_to_vmem [thread:$0]  %s2922_s1, 1536, %s43_s26, [#allocation6], %s2378_s20, %s2378_s20, %s2379_s21  }
  0x17   :  { %s2210_s27 = scalar_lea.hbm %s2925_s4, 3072 }
  0x18   :  { %p2211_p8 = scmp.ne.s32.totalorder %s2925_s4, %s2210_s27  ;;  %p2214_p9 = scmp.lt.u32.totalorder %s2210_s27, %s2925_s4 }
  0x1a   :  { %p2216_p10 = pnand %p2214_p9, %p2211_p8 }
  0x1c   :  { %2219 = shalt.err (!%p2216_p10)
}
  0x1d   :  { %s2220_s16 = scalar_lea.vmem %s2461_s28, 3072  ;;  %p2225_p12 = scmp.lt.s32.totalorder %s2461_s28, %s2461_s28 }
  0x1e   :  { %p2221_p11 = scmp.ne.s32.totalorder %s2461_s28, %s2220_s16  ;;  %p2226_p13 = scmp.lt.s32.totalorder %s2220_s16, %s2220_s16 }
  0x20   :  { %p2227_p0 = por %p2226_p13, %p2225_p12 }
  0x22   :  { %p2228_p1 = pnand %p2227_p0, %p2221_p11 }
  0x24   :  { %2231 = shalt.err (!%p2228_p1)
}
  0x25   :  { %s2380_s1 = smov 192   ;;  %s2381_s26 = smov 12  }
  0x26   :  { %74 = dma.hbm_to_vmem [thread:$0]  %s2925_s4, 3072, %s2461_s28, [#allocation9], %s2380_s1, %s2380_s1, %s2381_s26  }
  0x27   :  { %s2382_s19 = smov [#allocation2]   ;;  %s2383_s23 = smov [#allocation7]  }
  0x28   :  { %s30_s22 = sshll.u32 %s2382_s19, 4  ;;  %s54_s24 = sshll.u32 %s2383_s23, 4  ;;  %s31_s22 = int_to_ptr.vmem [resolvable:$true] %s30_s22  ;;  %s2495_s24 = int_to_ptr.vmem [resolvable:$true] %s54_s24 }
  0x29   :  { %s2232_s29 = scalar_lea.hbm %s2921_s0, 512 }
  0x2a   :  { %p2233_p2 = scmp.ne.s32.totalorder %s2921_s0, %s2232_s29  ;;  %p2236_p3 = scmp.lt.u32.totalorder %s2232_s29, %s2921_s0 }
  0x2c   :  { %p2238_p4 = pnand %p2236_p3, %p2233_p2 }
  0x2e   :  { %2241 = shalt.err (!%p2238_p4)
}
  0x2f   :  { %s2242_s4 = scalar_lea.vmem %s31_s22, 512  ;;  %p2247_p6 = scmp.lt.s32.totalorder %s31_s22, %s31_s22 }
  0x30   :  { %p2243_p5 = scmp.ne.s32.totalorder %s31_s22, %s2242_s4  ;;  %p2248_p7 = scmp.lt.s32.totalorder %s2242_s4, %s2242_s4 }
  0x32   :  { %p2249_p8 = por %p2248_p7, %p2247_p6 }
  0x34   :  { %p2250_p9 = pnand %p2249_p8, %p2243_p5 }
  0x36   :  { %2253 = shalt.err (!%p2250_p9)
}
  0x37   :  { %36 = dma.hbm_to_vmem [thread:$0]  %s2921_s0, 512, %s31_s22, [#allocation3], %s2378_s20, %s2378_s20, %s2379_s21  }
  0x38   :  { %s2254_s18 = scalar_lea.hbm %s2923_s2, 1024 }
  0x39   :  { %p2255_p10 = scmp.ne.s32.totalorder %s2923_s2, %s2254_s18  ;;  %p2258_p11 = scmp.lt.u32.totalorder %s2254_s18, %s2923_s2 }
  0x3b   :  { %p2260_p12 = pnand %p2258_p11, %p2255_p10 }
  0x3d   :  { %2263 = shalt.err (!%p2260_p12)
}
  0x3e   :  { %s2264_s29 = scalar_lea.vmem %s2495_s24, 1024  ;;  %p2269_p0 = scmp.lt.s32.totalorder %s2495_s24, %s2495_s24 }
  0x3f   :  { %p2265_p13 = scmp.ne.s32.totalorder %s2495_s24, %s2264_s29  ;;  %p2270_p1 = scmp.lt.s32.totalorder %s2264_s29, %s2264_s29 }
  0x41   :  { %p2271_p2 = por %p2270_p1, %p2269_p0 }
  0x43   :  { %p2272_p3 = pnand %p2271_p2, %p2265_p13 }
  0x45   :  { %2275 = shalt.err (!%p2272_p3)
}
  0x46   :  { %60 = dma.hbm_to_vmem [thread:$0]  %s2923_s2, 1024, %s2495_s24, [#allocation6], %s2378_s20, %s2378_s20, %s2379_s21  }
  0x47   :  { %s2384_s30 = smov [#allocation10]   ;;  %s2385_s15 = smov [#allocation11]  }
  0x48   :  { %s84_s14 = sshll.u32 %s2384_s30, 4  ;;  %s100_s16 = sshll.u32 %s2385_s15, 4  ;;  %s85_s14 = int_to_ptr.vmem [resolvable:$true] %s84_s14  ;;  %s2532_s16 = int_to_ptr.vmem [resolvable:$true] %s100_s16 }
  0x49   :  { %s2276_s1 = scalar_lea.hbm %s2928_s7, 1024 }
  0x4a   :  { %p2277_p4 = scmp.ne.s32.totalorder %s2928_s7, %s2276_s1  ;;  %p2280_p5 = scmp.lt.u32.totalorder %s2276_s1, %s2928_s7 }
  0x4c   :  { %p2282_p6 = pnand %p2280_p5, %p2277_p4 }
  0x4e   :  { %2285 = shalt.err (!%p2282_p6)
}
  0x4f   :  { %s2286_s2 = scalar_lea.vmem %s85_s14, 1024  ;;  %p2291_p8 = scmp.lt.s32.totalorder %s85_s14, %s85_s14 }
  0x50   :  { %p2287_p7 = scmp.ne.s32.totalorder %s85_s14, %s2286_s2  ;;  %p2292_p9 = scmp.lt.s32.totalorder %s2286_s2, %s2286_s2 }
  0x52   :  { %p2293_p10 = por %p2292_p9, %p2291_p8 }
  0x54   :  { %p2294_p11 = pnand %p2293_p10, %p2287_p7 }
  0x56   :  { %2297 = shalt.err (!%p2294_p11)
}
  0x57   :  { %90 = dma.hbm_to_vmem [thread:$0]  %s2928_s7, 1024, %s85_s14, [#allocation9], %s2378_s20, %s2378_s20, %s2379_s21  }
  0x58   :  { %s2298_s29 = scalar_lea.hbm %s2931_s10, 1024 }
  0x59   :  { %p2299_p12 = scmp.ne.s32.totalorder %s2931_s10, %s2298_s29  ;;  %p2302_p13 = scmp.lt.u32.totalorder %s2298_s29, %s2931_s10 }
  0x5b   :  { %p2304_p0 = pnand %p2302_p13, %p2299_p12 }
  0x5d   :  { %2307 = shalt.err (!%p2304_p0)
}
  0x5e   :  { %s2308_s4 = scalar_lea.vmem %s2532_s16, 1024  ;;  %p2313_p2 = scmp.lt.s32.totalorder %s2532_s16, %s2532_s16 }
  0x5f   :  { %p2309_p1 = scmp.ne.s32.totalorder %s2532_s16, %s2308_s4  ;;  %p2314_p3 = scmp.lt.s32.totalorder %s2308_s4, %s2308_s4 }
  0x61   :  { %p2315_p4 = por %p2314_p3, %p2313_p2 }
  0x63   :  { %p2316_p5 = pnand %p2315_p4, %p2309_p1 }
  0x65   :  { %2319 = shalt.err (!%p2316_p5)
}
  0x66   :  { %106 = dma.hbm_to_vmem [thread:$0]  %s2931_s10, 1024, %s2532_s16, [#allocation12], %s2378_s20, %s2378_s20, %s2379_s21  }
  0x67   :  { %2364 = dma.done.wait [#allocation3], 512  }
  0x68   :  { %2365 = vsyncadd [#allocation3], 4294966784 }
  0x69   :  { %2366 = dma.done.wait [#allocation6], 2560  }
  0x6a   :  { %2367 = vsyncadd [#allocation6], 4294964736 }
  0x6b   :  { %2368 = dma.done.wait [#allocation9], 4096  }
  0x6c   :  { %2369 = vsyncadd [#allocation9], 4294963200 }
  0x6d   :  { %2370 = dma.done.wait [#allocation12], 1024  }
  0x6e   :  { %2371 = vsyncadd [#allocation12], 4294966272  ;;  %v2050_v0 = vld [vmem:[#allocation7] sm:$0xff]   ;;  %v2051_v1 = vld [vmem:[#allocation7 + $0x8] sm:$0xff]   ;;  %v2386_v36 = vmov 0   ;;  %vm693_vm8 = vcmask 523264  }
  0x6f   :  { %1891 = vmatprep.subr.bf16.mxu0 %v2050_v0  ;;  %v2052_v2 = vld [vmem:[#allocation7 + $0x10] sm:$0xff]   ;;  %v2053_v3 = vld [vmem:[#allocation7 + $0x18] sm:$0xff]   ;;  %v2058_v4 = vld [vmem:[#allocation2] sm:$0xff]   ;;  %540 = vmatprep.mubr.bf16.mxu1 %v2386_v36 }
  0x70   :  { %1892 = vmatpush3.bf16.msra.mxu0 %v2050_v0  ;;  %1907 = vmatprep.mubr.bf16.mxu0 %v2058_v4  ;;  %v2054_v5 = vld [vmem:[#allocation7 + $0x20] sm:$0xff]   ;;  %v2066_v8 = vld [vmem:[#allocation8 + $0x1c] ss:$12 sps:$4 sm:$0xff]   ;;  %v2056_v11 = vld [vmem:[#allocation7 + $0x30] sm:$0xff]  }
  0x71   :  { %1893 = vmatprep.subr.bf16.mxu0 %v2051_v1  ;;  %v2062_v6 = vld [vmem:[#allocation8 + $0x4] ss:$12 sps:$4 sm:$0xff]   ;;  %v2064_v7 = vld [vmem:[#allocation8] ss:$12 sps:$4 sm:$0xff]   ;;  %v2057_v12 = vld [vmem:[#allocation7 + $0x38] sm:$0xff]  }
  0x72   :  { %508 = vmatprep.subr.bf16.mxu1 %v2062_v6  ;;  %v2068_v9 = vld [vmem:[#allocation8 + $0x18] ss:$12 sps:$4 sm:$0xff]   ;;  %v2055_v10 = vld [vmem:[#allocation7 + $0x28] sm:$0xff]   ;;  %v2060_v15 = vld [vmem:[#allocation2 + $0x10] sm:$0xff]  }
  0x73   :  { %509 = vmatpush1.bf16.msra.mxu1 %v2064_v7  ;;  %v2065_v13 = vld [vmem:[#allocation8 + $0x8] ss:$12 sps:$4 sm:$0xff]   ;;  %v2069_v16 = vld [vmem:[#allocation8 + $0x20] ss:$12 sps:$4 sm:$0xff]   ;;  %v2061_v17 = vld [vmem:[#allocation2 + $0x18] sm:$0xff]  }
  0x74   :  { %1894 = vmatpush3.bf16.msra.mxu0 %v2051_v1  ;;  %510 = vmatprep.subr.bf16.mxu1 %v2066_v8  ;;  %v2059_v14 = vld [vmem:[#allocation2 + $0x8] sm:$0xff]   ;;  %v2070_v18 = vld [vmem:[#allocation8 + $0x34] ss:$12 sps:$4 sm:$0xff]   ;;  %v2072_v19 = vld [vmem:[#allocation8 + $0x30] ss:$12 sps:$4 sm:$0xff]  }
  0x75   :  { %1895 = vmatprep.subr.bf16.mxu0 %v2052_v2  ;;  %v2073_v20 = vld [vmem:[#allocation8 + $0x38] ss:$12 sps:$4 sm:$0xff]   ;;  %v2076_v22 = vld [vmem:[#allocation8 + $0x48] ss:$12 sps:$4 sm:$0xff]   ;;  %v2077_v23 = vld [vmem:[#allocation8 + $0x50] ss:$12 sps:$4 sm:$0xff]  }
  0x76   :  { %v2074_v21 = vld [vmem:[#allocation8 + $0x4c] ss:$12 sps:$4 sm:$0xff]   ;;  %v2078_v24 = vld [vmem:[#allocation8 + $0x64] ss:$12 sps:$4 sm:$0xff]   ;;  %v2081_v26 = vld [vmem:[#allocation8 + $0x68] ss:$12 sps:$4 sm:$0xff]  }
  0x77   :  { %511 = vmatpush1.bf16.msra.mxu1 %v2068_v9  ;;  %v2080_v25 = vld [vmem:[#allocation8 + $0x60] ss:$12 sps:$4 sm:$0xff]   ;;  %v2082_v27 = vld [vmem:[#allocation8 + $0x7c] ss:$12 sps:$4 sm:$0xff]   ;;  %v2084_v28 = vld [vmem:[#allocation8 + $0x78] ss:$12 sps:$4 sm:$0xff]  }
  0x78   :  { %1896 = vmatpush3.bf16.msra.mxu0 %v2052_v2  ;;  %512 = vmatprep.subr.bf16.mxu1 %v2070_v18  ;;  %v2085_v29 = vld [vmem:[#allocation8 + $0x80] ss:$12 sps:$4 sm:$0xff]   ;;  %v2088_v31 = vld [vmem:[#allocation8 + $0x90] ss:$12 sps:$4 sm:$0xff]   ;;  %v2089_v32 = vld [vmem:[#allocation8 + $0x98] ss:$12 sps:$4 sm:$0xff]  }
  0x79   :  { %1897 = vmatprep.subr.bf16.mxu0 %v2053_v3  ;;  %v2086_v30 = vld [vmem:[#allocation8 + $0x94] ss:$12 sps:$4 sm:$0xff]   ;;  %v2090_v33 = vld [vmem:[#allocation8 + $0xac] ss:$12 sps:$4 sm:$0xff]   ;;  %v2093_v35 = vld [vmem:[#allocation8 + $0xb0] ss:$12 sps:$4 sm:$0xff]  }
  0x7a   :  { %v2092_v34 = vld [vmem:[#allocation8 + $0xa8] ss:$12 sps:$4 sm:$0xff]   ;;  %v2570_v37 = vld [vmem:[#allocation10] sm:$0xff]  }
  0x7b   :  { %513 = vmatpush1.bf16.msra.mxu1 %v2072_v19  ;;  %v1731_v38 = vld [vmem:[%s2924_s3] ss:$0 sm:$0xff] }
  0x7c   :  { %1898 = vmatpush3.bf16.msra.mxu0 %v2053_v3  ;;  %514 = vmatprep.subr.bf16.mxu1 %v2074_v21 }
  0x7d   :  { %1899 = vmatprep.subr.bf16.mxu0 %v2054_v5 }
  0x7f   :  { %515 = vmatpush1.bf16.msra.mxu1 %v2076_v22  ;;  %v2095_v22 = vld [vmem:[#allocation10 + $0x8] sm:$0xff]  }
  0x80   :  { %1900 = vmatpush3.bf16.msra.mxu0 %v2054_v5  ;;  %516 = vmatprep.subr.bf16.mxu1 %v2078_v24 }
  0x81   :  { %1901 = vmatprep.subr.bf16.mxu0 %v2055_v10 }
  0x83   :  { %517 = vmatpush1.bf16.msra.mxu1 %v2080_v25 }
  0x84   :  { %1902 = vmatpush3.bf16.msra.mxu0 %v2055_v10  ;;  %518 = vmatprep.subr.bf16.mxu1 %v2082_v27 }
  0x85   :  { %1903 = vmatprep.subr.bf16.mxu0 %v2056_v11 }
  0x87   :  { %519 = vmatpush1.bf16.msra.mxu1 %v2084_v28 }
  0x88   :  { %1904 = vmatpush3.bf16.msra.mxu0 %v2056_v11  ;;  %520 = vmatprep.subr.bf16.mxu1 %v2086_v30  ;;  %v2096_v30 = vld [vmem:[#allocation10 + $0x10] sm:$0xff]  }
  0x89   :  { %1905 = vmatprep.subr.bf16.mxu0 %v2057_v12 }
  0x8b   :  { %521 = vmatpush1.bf16.msra.mxu1 %v2088_v31 }
  0x8c   :  { %1906 = vmatpush3.bf16.msra.mxu0 %v2057_v12  ;;  %522 = vmatprep.subr.bf16.mxu1 %v2090_v33 }
  0x8d   :  { %1915 = vmatprep.subr.bf16.mxu0 %v2065_v13 }
  0x8f   :  { %1908 = vmatmul.mubr.bf16.vlgmr.msra.gmra.mrb[0].mxu0 %v2059_v14  ;;  %523 = vmatpush1.bf16.msra.mxu1 %v2092_v34 }
  0x90   :  { %1911 = vmatprep.mubr.bf16.mxu0 %v2060_v15  ;;  %1916 = vmatpush3.bf16.msra.mxu0 %v2065_v13 }
  0x91   :  { %1917 = vmatprep.subr.bf16.mxu0 %v2069_v16 }
  0x94   :  { %1918 = vmatpush3.bf16.msra.mxu0 %v2069_v16 }
  0x95   :  { %1919 = vmatprep.subr.bf16.mxu0 %v2073_v20 }
  0x97   :  { %1912 = vmatmul.mubr.bf16.gmra.mrb[4].mxu0 %v2061_v17 }
  0x98   :  { %1920 = vmatpush3.bf16.msra.mxu0 %v2073_v20 }
  0x99   :  { %1921 = vmatprep.subr.bf16.mxu0 %v2077_v23 }
  0x9c   :  { %1922 = vmatpush3.bf16.msra.mxu0 %v2077_v23 }
  0x9d   :  { %1923 = vmatprep.subr.bf16.mxu0 %v2081_v26 }
  0xa0   :  { %1924 = vmatpush3.bf16.msra.mxu0 %v2081_v26 }
  0xa1   :  { %1925 = vmatprep.subr.bf16.mxu0 %v2085_v29 }
  0xa4   :  { %1926 = vmatpush3.bf16.msra.mxu0 %v2085_v29 }
  0xa5   :  { %1927 = vmatprep.subr.bf16.mxu0 %v2089_v32 }
  0xa8   :  { %1928 = vmatpush3.bf16.msra.mxu0 %v2089_v32 }
  0xa9   :  { %1929 = vmatprep.subr.bf16.mxu0 %v2093_v35 }
  0xac   :  { %1930 = vmatpush3.bf16.msra.mxu0 %v2093_v35 }
  0xad   :  { %1955 = vmatprep.subr.bf16.mxu0 %v2570_v37 }
 0x162   :  { %v1909_v39 = vpop.f32.mrb[0].mxu0 }
 0x163   :  { %v274_v40 = vadd.f32 %v1909_v39, %v1731_v38  ;;  %v265_v41 = vpop.f32.mrb[1].mxu0  ;;  %v2097_v39 = vld [vmem:[#allocation10 + $0x18] sm:$0xff]  }
 0x164   :  { %v266_v42 = vadd.f32 %v1731_v38, %v265_v41  ;;  %v1910_v43 = vpop.f32.mrb[2].mxu0  ;;  %v2100_v41 = vld [vmem:[#allocation10 + $0x30] sm:$0xff]  }
 0x165   :  { %v306_v44 = vmin.f32 %v274_v40, 0.0  ;;  %v277_v45 = vadd.f32 %v1910_v43, %v1731_v38  ;;  %v268_v46 = vpop.f32.mrb[3].mxu0  ;;  %vm298_vm0 = vcmp.gt.f32.partialorder %v274_v40, 0.0  ;;  %v2102_v43 = vld [vmem:[#allocation5 + $0x20] sm:$0xff]  }
 0x166   :  { %v304_v47 = vmin.f32 %v266_v42, 0.0  ;;  %v269_v48 = vadd.f32 %v1731_v38, %v268_v46  ;;  %vm296_vm2 = vcmp.gt.f32.partialorder %v266_v42, 0.0 }
 0x167   :  { %v316_v49 = vmul.f32 1.442695, %v306_v44  ;;  %v307_v50 = vmin.f32 %v277_v45, 0.0  ;;  %vm299_vm1 = vcmp.gt.f32.partialorder %v277_v45, 0.0 }
 0x168   :  { %v312_v51 = vmul.f32 1.442695, %v304_v47  ;;  %v305_v52 = vmin.f32 %v269_v48, 0.0  ;;  %vm297_vm3 = vcmp.gt.f32.partialorder %v269_v48, 0.0 }
 0x169   :  { %2122 = vpow2.f32 %v316_v49  ;;  %v318_v53 = vmul.f32 1.442695, %v307_v50 }
 0x16a   :  { %2124 = vpow2.f32 %v312_v51  ;;  %v314_v54 = vmul.f32 1.442695, %v305_v52  ;;  %v1913_v55 = vpop.f32.mrb[4].mxu0 }
 0x16b   :  { %2126 = vpow2.f32 %v318_v53  ;;  %v290_v56 = vadd.f32 %v1913_v55, %v1731_v38  ;;  %v281_v57 = vpop.f32.mrb[5].mxu0 }
 0x16c   :  { %2128 = vpow2.f32 %v314_v54  ;;  %v282_v58 = vadd.f32 %v1731_v38, %v281_v57  ;;  %v1914_v59 = vpop.f32.mrb[6].mxu0 }
 0x16d   :  { %v310_v60 = vmin.f32 %v290_v56, 0.0  ;;  %v293_v61 = vadd.f32 %v1914_v59, %v1731_v38  ;;  %v284_v62 = vpop.f32.mrb[7].mxu0  ;;  %vm302_vm4 = vcmp.gt.f32.partialorder %v290_v56, 0.0 }
 0x16e   :  { %v308_v63 = vmin.f32 %v282_v58, 0.0  ;;  %v285_v0 = vadd.f32 %v1731_v38, %v284_v62  ;;  %vm300_vm6 = vcmp.gt.f32.partialorder %v282_v58, 0.0 }
 0x16f   :  { %v324_v1 = vmul.f32 1.442695, %v310_v60  ;;  %v311_v2 = vmin.f32 %v293_v61, 0.0  ;;  %vm303_vm5 = vcmp.gt.f32.partialorder %v293_v61, 0.0 }
 0x170   :  { %v320_v3 = vmul.f32 1.442695, %v308_v63  ;;  %v309_v4 = vmin.f32 %v285_v0, 0.0  ;;  %vm301_vm7 = vcmp.gt.f32.partialorder %v285_v0, 0.0 }
 0x171   :  { %2130 = vpow2.f32 %v324_v1  ;;  %v326_v5 = vmul.f32 1.442695, %v311_v2 }
 0x172   :  { %2132 = vpow2.f32 %v320_v3  ;;  %v322_v6 = vmul.f32 1.442695, %v309_v4 }
 0x173   :  { %v2123_v7 = vpop.eup %2122  ;;  %2134 = vpow2.f32 %v326_v5 }
 0x174   :  { %v2125_v8 = vpop.eup %2124  ;;  %v1746_v9 = vadd.f32 -1.0, %v2123_v7  ;;  %2136 = vpow2.f32 %v322_v6 }
 0x175   :  { %v2127_v10 = vpop.eup %2126  ;;  %v1744_v11 = vadd.f32 -1.0, %v2125_v8 }
 0x176   :  { %v2129_v12 = vpop.eup %2128  ;;  %v1747_v13 = vadd.f32 -1.0, %v2127_v10  ;;  %v338_v15 = vsel %vm298_vm0, %v274_v40, %v1746_v9  ;;  %v2099_v40 = vld [vmem:[#allocation10 + $0x28] sm:$0xff]  }
 0x177   :  { %v1745_v14 = vadd.f32 -1.0, %v2129_v12  ;;  %v336_v18 = vsel %vm296_vm2, %v266_v42, %v1744_v11  ;;  %v2101_v42 = vld [vmem:[#allocation10 + $0x38] sm:$0xff]  }
 0x178   :  { %v339_v16 = vsel %vm299_vm1, %v277_v45, %v1747_v13 }
 0x179   :  { %v345_v17 = vpack.c.bf16 %v339_v16, %v338_v15  ;;  %v337_v19 = vsel %vm297_vm3, %v269_v48, %v1745_v14  ;;  %v2104_v15 = vld [vmem:[#allocation11] sm:$0xff]   ;;  %v2103_v16 = vld [vmem:[#allocation5 + $0x28] sm:$0xff]  }
 0x17a   :  { %v344_v20 = vpack.c.bf16 %v337_v19, %v336_v18  ;;  %v2105_v18 = vld [vmem:[#allocation11 + $0x8] sm:$0xff]   ;;  %v2108_v19 = vld [vmem:[#allocation11 + $0x10] sm:$0xff]  }
 0x17b   :  { %v2131_v21 = vpop.eup %2130 }
 0x17c   :  { %v2133_v23 = vpop.eup %2132  ;;  %v1750_v24 = vadd.f32 -1.0, %v2131_v21  ;;  %541 = vmatmul.mubr.bf16.vlgmr.msra.gmra.mrb[0].mxu1 %v344_v20  ;;  %1931 = vmatprep.mubr.bf16.mxu0 %v344_v20  ;;  %v2107_v20 = vld [vmem:[#allocation5 + $0x38] sm:$0xff]  }
 0x17d   :  { %v2135_v25 = vpop.eup %2134  ;;  %v1748_v26 = vadd.f32 -1.0, %v2133_v23  ;;  %1932 = vmatmul.mubr.bf16.vlgmr.msra.gmra.mrb[8].mxu0 %v345_v17  ;;  %550 = vmatprep.mubr.bf16.mxu1 %v2386_v36  ;;  %v2109_v21 = vld [vmem:[#allocation11 + $0x18] sm:$0xff]   ;;  %v2111_v23 = vld [vmem:[#allocation11 + $0x28] sm:$0xff]  }
 0x17e   :  { %v2137_v27 = vpop.eup %2136  ;;  %v1751_v28 = vadd.f32 -1.0, %v2135_v25  ;;  %1956 = vmatpush3.bf16.msra.mxu0 %v2570_v37  ;;  %v342_v31 = vsel %vm302_vm4, %v290_v56, %v1750_v24  ;;  %v2098_v37 = vld [vmem:[#allocation10 + $0x20] sm:$0xff]   ;;  %v2112_v24 = vld [vmem:[#allocation11 + $0x30] sm:$0xff]   ;;  %v2113_v25 = vld [vmem:[#allocation11 + $0x38] sm:$0xff]  }
 0x17f   :  { %v1749_v29 = vadd.f32 -1.0, %v2137_v27  ;;  %1957 = vmatprep.subr.bf16.mxu0 %v2095_v22  ;;  %v340_v33 = vsel %vm300_vm6, %v282_v58, %v1748_v26  ;;  %v669_v26 = vlaneseq }
 0x180   :  { %v343_v32 = vsel %vm303_vm5, %v293_v61, %v1751_v28 }
 0x181   :  { %v341_v34 = vsel %vm301_vm7, %v285_v0, %v1749_v29  ;;  %v347_v35 = vpack.c.bf16 %v343_v32, %v342_v31  ;;  %v2602_v27 = vshrl.u32 %v669_v26, 7  ;;  %v2608_v29 = vld [vmem:[%s2926_s5] sm:$0x7] }
 0x182   :  { %v346_v38 = vpack.c.bf16 %v341_v34, %v340_v33  ;;  %1958 = vmatpush3.bf16.msra.mxu0 %v2095_v22  ;;  %v2110_v22 = vld [vmem:[#allocation11 + $0x20] sm:$0xff]  }
 0x183   :  { %1959 = vmatprep.subr.bf16.mxu0 %v2096_v30  ;;  %v671_v28 = vsub.s32 1, %v2602_v27  ;;  %v1223_v26 = vsub.s32 0, %v2602_v27 }
 0x184   :  { %551 = vmatmul.mubr.bf16.gmra.mrb[4].mxu1 %v345_v17  ;;  %1935 = vmatprep.mubr.bf16.mxu0 %v346_v38  ;;  %v2106_v17 = vld [vmem:[#allocation5 + $0x30] sm:$0xff]  }
 0x185   :  { %1936 = vmatmul.mubr.bf16.gmra.mrb[12].mxu0 %v347_v35  ;;  %560 = vmatprep.mubr.bf16.mxu1 %v2386_v36  ;;  %v672_v31 = vrot.slane %v2608_v29, %v671_v28 }
 0x186   :  { %1960 = vmatpush3.bf16.msra.mxu0 %v2096_v30  ;;  %v2613_v30 = vld [vmem:[%s2927_s6] sm:$0x7] }
 0x187   :  { %1961 = vmatprep.subr.bf16.mxu0 %v2097_v39  ;;  %v782_v33 = vrot.slane %v2613_v30, %v671_v28 }
 0x18a   :  { %1962 = vmatpush3.bf16.msra.mxu0 %v2097_v39 }
 0x18b   :  { %1963 = vmatprep.subr.bf16.mxu0 %v2098_v37 }
 0x18c   :  { %561 = vmatmul.mubr.bf16.gmra.mrb[8].mxu1 %v346_v38 }
 0x18d   :  { %570 = vmatprep.mubr.bf16.mxu1 %v2386_v36 }
 0x18e   :  { %1964 = vmatpush3.bf16.msra.mxu0 %v2098_v37 }
 0x18f   :  { %1965 = vmatprep.subr.bf16.mxu0 %v2099_v40 }
 0x192   :  { %1966 = vmatpush3.bf16.msra.mxu0 %v2099_v40 }
 0x193   :  { %1967 = vmatprep.subr.bf16.mxu0 %v2100_v41 }
 0x194   :  { %571 = vmatmul.mubr.bf16.gmra.mrb[12].mxu1 %v347_v35 }
 0x195   :  { %1947 = vmatprep.mubr.msk.bf16.mxu1 %vm693_vm8, %v2102_v43 }
 0x196   :  { %1968 = vmatpush3.bf16.msra.mxu0 %v2100_v41 }
 0x197   :  { %1969 = vmatprep.subr.bf16.mxu0 %v2101_v42 }
 0x19a   :  { %1970 = vmatpush3.bf16.msra.mxu0 %v2101_v42 }
 0x24f   :  { %v542_v44 = vpop.f32.mrb[0].mxu1 }
 0x250   :  { %v544_v45 = vpop.f32.mrb[1].mxu1  ;;  %v1933_v46 = vpop.f32.mrb[8].mxu0 }
 0x251   :  { %v546_v47 = vpop.f32.mrb[2].mxu1  ;;  %v615_v48 = vpop.f32.mrb[9].mxu0 }
 0x252   :  { %v2581_v36 = vpack.c.bf16 %v546_v47, %v542_v44  ;;  %v548_v49 = vpop.f32.mrb[3].mxu1  ;;  %v1934_v50 = vpop.f32.mrb[10].mxu0 }
 0x253   :  { %v647_v51 = vpack.c.bf16 %v548_v49, %v544_v45  ;;  %v2583_v52 = vpack.c.bf16 %v1934_v50, %v1933_v46  ;;  %v618_v53 = vpop.f32.mrb[11].mxu0 }
 0x254   :  { %v2585_v54 = vpack.c.bf16 %v618_v53, %v615_v48  ;;  %2003 = vmatprep.subr.bf16.mxu0 %v2581_v36 }
 0x255   :  { %1939 = vmatprep.subr.bf16.mxu1 %v647_v51 }
 0x256   :  { %1940 = vmatpush3.bf16.msra.mxu1 %v647_v51 }
 0x257   :  { %v552_v55 = vpop.f32.mrb[4].mxu1 }
 0x258   :  { %v554_v56 = vpop.f32.mrb[5].mxu1  ;;  %v1937_v57 = vpop.f32.mrb[12].mxu0 }
 0x259   :  { %v556_v58 = vpop.f32.mrb[6].mxu1  ;;  %v631_v59 = vpop.f32.mrb[13].mxu0 }
 0x25a   :  { %v2588_v60 = vpack.c.bf16 %v556_v58, %v552_v55  ;;  %v558_v61 = vpop.f32.mrb[7].mxu1  ;;  %v1938_v62 = vpop.f32.mrb[14].mxu0 }
 0x25b   :  { %v650_v63 = vpack.c.bf16 %v558_v61, %v554_v56  ;;  %v2590_v0 = vpack.c.bf16 %v1938_v62, %v1937_v57  ;;  %v634_v1 = vpop.f32.mrb[15].mxu0 }
 0x25c   :  { %v2592_v2 = vpack.c.bf16 %v634_v1, %v631_v59 }
 0x25d   :  { %1941 = vmatprep.subr.bf16.mxu1 %v650_v63 }
 0x25e   :  { %1942 = vmatpush3.bf16.msra.mxu1 %v650_v63 }
 0x25f   :  { %v562_v3 = vpop.f32.mrb[8].mxu1 }
 0x260   :  { %v564_v4 = vpop.f32.mrb[9].mxu1 }
 0x261   :  { %v566_v5 = vpop.f32.mrb[10].mxu1 }
 0x262   :  { %v2594_v6 = vpack.c.bf16 %v566_v5, %v562_v3  ;;  %v568_v7 = vpop.f32.mrb[11].mxu1 }
 0x263   :  { %v653_v8 = vpack.c.bf16 %v568_v7, %v564_v4 }
 0x265   :  { %1943 = vmatprep.subr.bf16.mxu1 %v653_v8 }
 0x266   :  { %1944 = vmatpush3.bf16.msra.mxu1 %v653_v8 }
 0x267   :  { %v572_v9 = vpop.f32.mrb[12].mxu1 }
 0x268   :  { %v574_v10 = vpop.f32.mrb[13].mxu1 }
 0x269   :  { %v576_v11 = vpop.f32.mrb[14].mxu1 }
 0x26a   :  { %v2596_v12 = vpack.c.bf16 %v576_v11, %v572_v9  ;;  %v578_v13 = vpop.f32.mrb[15].mxu1  ;;  %v2114_v11 = vld [vmem:[#allocation5] sm:$0xff]  }
 0x26b   :  { %v656_v14 = vpack.c.bf16 %v578_v13, %v574_v10  ;;  %v2116_v13 = vld [vmem:[#allocation5 + $0x10] sm:$0xff]  }
 0x26d   :  { %1945 = vmatprep.subr.bf16.mxu1 %v656_v14 }
 0x26e   :  { %1946 = vmatpush3.bf16.msra.mxu1 %v656_v14  ;;  %v2117_v14 = vld [vmem:[#allocation5 + $0x18] sm:$0xff]  }
 0x26f   :  { %1979 = vmatprep.subr.bf16.mxu1 %v2104_v15 }
 0x271   :  { %1948 = vmatmul.mubr.msk.bf16.vlgmr.msra.gmra.mrb[16].mxu1 %vm693_vm8, %v2103_v16 }
 0x272   :  { %1980 = vmatpush3.bf16.msra.mxu1 %v2104_v15  ;;  %1951 = vmatprep.mubr.msk.bf16.mxu1 %vm693_vm8, %v2106_v17 }
 0x273   :  { %1981 = vmatprep.subr.bf16.mxu1 %v2105_v18 }
 0x276   :  { %1982 = vmatpush3.bf16.msra.mxu1 %v2105_v18 }
 0x277   :  { %1983 = vmatprep.subr.bf16.mxu1 %v2108_v19 }
 0x279   :  { %1952 = vmatmul.mubr.msk.bf16.gmra.mrb[20].mxu1 %vm693_vm8, %v2107_v20 }
 0x27a   :  { %1984 = vmatpush3.bf16.msra.mxu1 %v2108_v19 }
 0x27b   :  { %1985 = vmatprep.subr.bf16.mxu1 %v2109_v21 }
 0x27e   :  { %1986 = vmatpush3.bf16.msra.mxu1 %v2109_v21 }
 0x27f   :  { %1987 = vmatprep.subr.bf16.mxu1 %v2110_v22 }
 0x282   :  { %1988 = vmatpush3.bf16.msra.mxu1 %v2110_v22 }
 0x283   :  { %1989 = vmatprep.subr.bf16.mxu1 %v2111_v23 }
 0x286   :  { %1990 = vmatpush3.bf16.msra.mxu1 %v2111_v23 }
 0x287   :  { %1991 = vmatprep.subr.bf16.mxu1 %v2112_v24 }
 0x28a   :  { %1992 = vmatpush3.bf16.msra.mxu1 %v2112_v24 }
 0x28b   :  { %1993 = vmatprep.subr.bf16.mxu1 %v2113_v25 }
 0x28e   :  { %1994 = vmatpush3.bf16.msra.mxu1 %v2113_v25 }
 0x28f   :  { %2019 = vmatprep.subr.bf16.mxu1 %v2585_v54 }
 0x344   :  { %v1949_v32 = vpop.f32.mrb[16].mxu1 }
 0x345   :  { %v749_v34 = vadd.f32 %v1949_v32, %v672_v31  ;;  %v740_v35 = vpop.f32.mrb[17].mxu1 }
 0x346   :  { %v741_v38 = vadd.f32 %v740_v35, %v672_v31  ;;  %v1950_v39 = vpop.f32.mrb[18].mxu1 }
 0x347   :  { %v752_v37 = vadd.f32 %v1950_v39, %v672_v31  ;;  %v743_v40 = vpop.f32.mrb[19].mxu1  ;;  %v785_v43 = vmul.f32 %v782_v33, %v749_v34  ;;  %vm773_vm11 = vcmp.gt.f32.partialorder %v749_v34, 0.0 }
 0x348   :  { %v783_v41 = vmul.f32 %v782_v33, %v741_v38  ;;  %v744_v42 = vadd.f32 %v743_v40, %v672_v31  ;;  %vm771_vm9 = vcmp.gt.f32.partialorder %v741_v38, 0.0  ;;  %v1333_v40 = vrot.slane %v2613_v30, %v1223_v26 }
 0x349   :  { %vm774_vm10 = vcmp.gt.f32.partialorder %v752_v37, 0.0  ;;  %v786_v44 = vmul.f32 %v782_v33, %v752_v37  ;;  %v2623_v50 = vsel %vm773_vm11, %v749_v34, %v785_v43 }
 0x34a   :  { %vm772_vm12 = vcmp.gt.f32.partialorder %v744_v42, 0.0  ;;  %v784_v45 = vmul.f32 %v782_v33, %v744_v42  ;;  %v2619_v48 = vsel %vm771_vm9, %v741_v38, %v783_v41  ;;  %v1224_v38 = vrot.slane %v2608_v29, %v1223_v26 }
 0x34b   :  { %v2617_v46 = vsel %vm774_vm10, %v752_v37, %v786_v44 }
 0x34c   :  { %v1953_v47 = vpop.f32.mrb[20].mxu1  ;;  %v2621_v49 = vsel %vm772_vm12, %v744_v42, %v784_v45  ;;  %v800_v56 = vpack.c.bf16 %v2617_v46, %v2623_v50 }
 0x34d   :  { %v765_v51 = vadd.f32 %v1953_v47, %v672_v31  ;;  %v756_v53 = vpop.f32.mrb[21].mxu1  ;;  %v799_v55 = vpack.c.bf16 %v2621_v49, %v2619_v48 }
 0x34e   :  { %v757_v57 = vadd.f32 %v756_v53, %v672_v31  ;;  %v1954_v58 = vpop.f32.mrb[22].mxu1 }
 0x34f   :  { %v768_v59 = vadd.f32 %v1954_v58, %v672_v31  ;;  %v759_v61 = vpop.f32.mrb[23].mxu1  ;;  %1971 = vmatprep.mubr.bf16.mxu0 %v799_v55  ;;  %v789_v1 = vmul.f32 %v782_v33, %v765_v51  ;;  %vm777_vm15 = vcmp.gt.f32.partialorder %v765_v51, 0.0 }
 0x350   :  { %v787_v62 = vmul.f32 %v782_v33, %v757_v57  ;;  %v760_v63 = vadd.f32 %v759_v61, %v672_v31  ;;  %1972 = vmatmul.mubr.bf16.vlgmr.msra.gmra.mrb[16].mxu0 %v800_v56  ;;  %vm775_vm13 = vcmp.gt.f32.partialorder %v757_v57, 0.0 }
 0x351   :  { %vm778_vm14 = vcmp.gt.f32.partialorder %v768_v59, 0.0  ;;  %v790_v3 = vmul.f32 %v782_v33, %v768_v59  ;;  %2004 = vmatpush3.bf16.msra.mxu0 %v2581_v36  ;;  %v2640_v10 = vsel %vm777_vm15, %v765_v51, %v789_v1 }
 0x352   :  { %vm776_vm0 = vcmp.gt.f32.partialorder %v760_v63, 0.0  ;;  %v788_v4 = vmul.f32 %v782_v33, %v760_v63  ;;  %2005 = vmatprep.subr.bf16.mxu0 %v2588_v60  ;;  %v2633_v7 = vsel %vm775_vm13, %v757_v57, %v787_v62 }
 0x353   :  { %v2631_v5 = vsel %vm778_vm14, %v768_v59, %v790_v3 }
 0x354   :  { %v2635_v8 = vsel %vm776_vm0, %v760_v63, %v788_v4  ;;  %v802_v36 = vpack.c.bf16 %v2631_v5, %v2640_v10 }
 0x355   :  { %2006 = vmatpush3.bf16.msra.mxu0 %v2588_v60  ;;  %v801_v9 = vpack.c.bf16 %v2635_v8, %v2633_v7  ;;  %v2115_v60 = vld [vmem:[#allocation5 + $0x8] sm:$0xff]  }
 0x356   :  { %2007 = vmatprep.subr.bf16.mxu0 %v2594_v6 }
 0x357   :  { %1975 = vmatprep.mubr.bf16.mxu0 %v801_v9 }
 0x358   :  { %1976 = vmatmul.mubr.bf16.gmra.mrb[20].mxu0 %v802_v36 }
 0x359   :  { %2008 = vmatpush3.bf16.msra.mxu0 %v2594_v6  ;;  %2011 = vmatprep.mubr.msk.bf16.mxu0 %vm693_vm8, %v2114_v11  ;;  %v1784_v6 = vld [vmem:[%s2929_s8] ss:$0 sm:$0xff] }
 0x35a   :  { %2009 = vmatprep.subr.bf16.mxu0 %v2596_v12 }
 0x35d   :  { %2010 = vmatpush3.bf16.msra.mxu0 %v2596_v12 }
 0x360   :  { %2012 = vmatmul.mubr.msk.bf16.vlgmr.msra.gmra.mrb[24].mxu0 %vm693_vm8, %v2115_v60 }
 0x361   :  { %2015 = vmatprep.mubr.msk.bf16.mxu0 %vm693_vm8, %v2116_v13 }
 0x368   :  { %2016 = vmatmul.mubr.msk.bf16.gmra.mrb[28].mxu0 %vm693_vm8, %v2117_v14 }
 0x423   :  { %v1973_v15 = vpop.f32.mrb[16].mxu0 }
 0x424   :  { %v908_v16 = vpop.f32.mrb[17].mxu0  ;;  %v2659_v12 = vadd.f32 %v1973_v15, %v1784_v6 }
 0x425   :  { %v1974_v17 = vpop.f32.mrb[18].mxu0  ;;  %v2655_v19 = vadd.f32 %v1784_v6, %v908_v16 }
 0x426   :  { %v911_v18 = vpop.f32.mrb[19].mxu0  ;;  %v2663_v22 = vadd.f32 %v1974_v17, %v1784_v6 }
 0x427   :  { %v2657_v20 = vadd.f32 %v1784_v6, %v911_v18 }
 0x429   :  { %v939_v21 = vadd.f32 %v2657_v20, %v2655_v19 }
 0x42b   :  { %v940_v23 = vadd.f32 %v939_v21, %v2659_v12  ;;  %v1977_v24 = vpop.f32.mrb[20].mxu0 }
 0x42c   :  { %v924_v25 = vpop.f32.mrb[21].mxu0  ;;  %v2674_v39 = vadd.f32 %v1977_v24, %v1784_v6 }
 0x42d   :  { %v2667_v28 = vadd.f32 %v1784_v6, %v924_v25  ;;  %v941_v31 = vadd.f32 %v940_v23, %v2663_v22  ;;  %v1978_v32 = vpop.f32.mrb[22].mxu0 }
 0x42e   :  { %v927_v33 = vpop.f32.mrb[23].mxu0  ;;  %v2678_v41 = vadd.f32 %v1978_v32, %v1784_v6 }
 0x42f   :  { %v942_v34 = vadd.f32 %v941_v31, %v2667_v28  ;;  %v2671_v35 = vadd.f32 %v1784_v6, %v927_v33 }
 0x431   :  { %v943_v37 = vadd.f32 %v942_v34, %v2671_v35 }
 0x433   :  { %v944_v42 = vadd.f32 %v943_v37, %v2674_v39  ;;  %v2013_v43 = vpop.f32.mrb[24].mxu0 }
 0x434   :  { %v1300_v44 = vadd.f32 %v2013_v43, %v1224_v38  ;;  %v1291_v45 = vpop.f32.mrb[25].mxu0 }
 0x435   :  { %v945_v47 = vadd.f32 %v944_v42, %v2678_v41  ;;  %v1292_v51 = vadd.f32 %v1291_v45, %v1224_v38  ;;  %v2014_v53 = vpop.f32.mrb[26].mxu0 }
 0x436   :  { %v1336_v55 = vmul.f32 %v1333_v40, %v1300_v44  ;;  %v1303_v56 = vadd.f32 %v2014_v53, %v1224_v38  ;;  %v1294_v57 = vpop.f32.mrb[27].mxu0  ;;  %vm1324_vm1 = vcmp.gt.f32.partialorder %v1300_v44, 0.0 }
 0x437   :  { %v946_v58 = vrot.slane %v945_v47, 4  ;;  %vm1322_vm2 = vcmp.gt.f32.partialorder %v1292_v51, 0.0  ;;  %v1334_v59 = vmul.f32 %v1333_v40, %v1292_v51  ;;  %v1295_v61 = vadd.f32 %v1294_v57, %v1224_v38 }
 0x438   :  { %v1337_v62 = vmul.f32 %v1333_v40, %v1303_v56  ;;  %v2682_v63 = vsel %vm1324_vm1, %v1300_v44, %v1336_v55  ;;  %vm1325_vm3 = vcmp.gt.f32.partialorder %v1303_v56, 0.0 }
 0x439   :  { %v947_v1 = vadd.f32 %v946_v58, %v945_v47  ;;  %v1360_v3 = vmul.f32 %v2682_v63, %v2682_v63  ;;  %v1335_v4 = vmul.f32 %v1333_v40, %v1295_v61  ;;  %v2686_v9 = vsel %vm1322_vm2, %v1292_v51, %v1334_v59 }
 0x43a   :  { %v2688_v11 = vsel %vm1325_vm3, %v1303_v56, %v1337_v62  ;;  %vm1323_vm4 = vcmp.gt.f32.partialorder %v1295_v61, 0.0  ;;  %v1358_v13 = vmul.f32 %v2686_v9, %v2686_v9 }
 0x43b   :  { %v948_v36 = vrot.slane %v947_v1, 2  ;;  %v2017_v60 = vpop.f32.mrb[28].mxu0  ;;  %1370 = vadd.xlane.f32.xlu1 %v1360_v3  ;;  %v1361_v14 = vmul.f32 %v2688_v11, %v2688_v11  ;;  %v2694_v25 = vsel %vm1323_vm4, %v1295_v61, %v1335_v4 }
 0x43c   :  { %v1316_v15 = vadd.f32 %v2017_v60, %v1224_v38  ;;  %v1307_v6 = vpop.f32.mrb[29].mxu0  ;;  %v1359_v32 = vmul.f32 %v2694_v25, %v2694_v25 }
 0x43d   :  { %v949_v16 = vadd.f32 %v948_v36, %v947_v1  ;;  %v1308_v17 = vadd.f32 %v1307_v6, %v1224_v38  ;;  %v2018_v18 = vpop.f32.mrb[30].mxu0  ;;  %1372 = vadd.xlane.f32.xlu0 %v1361_v14 }
 0x43e   :  { %v1340_v21 = vmul.f32 %v1333_v40, %v1316_v15  ;;  %v1319_v23 = vadd.f32 %v2018_v18, %v1224_v38  ;;  %v1310_v24 = vpop.f32.mrb[31].mxu0  ;;  %vm1328_vm5 = vcmp.gt.f32.partialorder %v1316_v15, 0.0 }
 0x43f   :  { %v950_v26 = vrot.slane %v949_v16, 1  ;;  %v1311_v31 = vadd.f32 %v1310_v24, %v1224_v38  ;;  %1366 = vadd.xlane.f32.xlu1 %v1358_v13  ;;  %v1338_v33 = vmul.f32 %v1333_v40, %v1308_v17  ;;  %vm1326_vm7 = vcmp.gt.f32.partialorder %v1308_v17, 0.0 }
 0x440   :  { %vm1329_vm6 = vcmp.gt.f32.partialorder %v1319_v23, 0.0  ;;  %v1341_v34 = vmul.f32 %v1333_v40, %v1319_v23  ;;  %v2698_v43 = vsel %vm1328_vm5, %v1316_v15, %v1340_v21 }
 0x441   :  { %v951_v37 = vadd.f32 %v950_v26, %v949_v16  ;;  %vm1327_vm9 = vcmp.gt.f32.partialorder %v1311_v31, 0.0  ;;  %v1339_v42 = vmul.f32 %v1333_v40, %v1311_v31  ;;  %v1364_v38 = vmul.f32 %v2698_v43, %v2698_v43 }
 0x442   :  { %v2700_v44 = vsel %vm1329_vm6, %v1319_v23, %v1341_v34  ;;  %v2708_v53 = vsel %vm1326_vm7, %v1308_v17, %v1338_v33 }
 0x443   :  { %v953_v45 = vmul.f32 0.015625, %v951_v37  ;;  %1368 = vadd.xlane.f32.xlu1 %v1359_v32  ;;  %v2704_v47 = vsel %vm1327_vm9, %v1311_v31, %v1339_v42  ;;  %v1793_v32 = vld [vmem:[%s2930_s9] ss:$0 sm:$0xff] }
 0x444   :  { %v1363_v51 = vmul.f32 %v2704_v47, %v2704_v47 }
 0x445   :  { %v954_v55 = vsub.f32 %v2655_v19, %v953_v45  ;;  %v955_v40 = vsub.f32 %v2657_v20, %v953_v45  ;;  %v956_v56 = vsub.f32 %v2659_v12, %v953_v45  ;;  %v957_v57 = vsub.f32 %v2663_v22, %v953_v45 }
 0x446   :  { %v958_v58 = vsub.f32 %v2667_v28, %v953_v45  ;;  %v959_v59 = vsub.f32 %v2671_v35, %v953_v45  ;;  %v960_v61 = vsub.f32 %v2674_v39, %v953_v45  ;;  %v961_v62 = vsub.f32 %v2678_v41, %v953_v45  ;;  %1376 = vadd.xlane.f32.xlu0 %v1363_v51 }
 0x447   :  { %v962_v1 = vmul.f32 %v954_v55, %v954_v55  ;;  %v963_v3 = vmul.f32 %v955_v40, %v955_v40  ;;  %1378 = vadd.xlane.f32.xlu1 %v1364_v38  ;;  %v1362_v19 = vmul.f32 %v2708_v53, %v2708_v53  ;;  %v964_v20 = vmul.f32 %v956_v56, %v956_v56 }
 0x448   :  { %v965_v12 = vmul.f32 %v957_v57, %v957_v57  ;;  %v966_v22 = vmul.f32 %v958_v58, %v958_v58  ;;  %v967_v60 = vmul.f32 %v959_v59, %v959_v59  ;;  %v968_v13 = vmul.f32 %v960_v61, %v960_v61 }
 0x449   :  { %v970_v4 = vadd.f32 %v963_v3, %v962_v1  ;;  %v969_v14 = vmul.f32 %v961_v62, %v961_v62 }
 0x44b   :  { %v971_v36 = vadd.f32 %v970_v4, %v964_v20  ;;  %1374 = vadd.xlane.f32.xlu1 %v1362_v19 }
 0x44d   :  { %v972_v28 = vadd.f32 %v971_v36, %v965_v12 }
 0x44f   :  { %v973_v35 = vadd.f32 %v972_v28, %v966_v22 }
 0x451   :  { %v974_v39 = vadd.f32 %v973_v35, %v967_v60 }
 0x453   :  { %v975_v41 = vadd.f32 %v974_v39, %v968_v13 }
 0x455   :  { %v976_v15 = vadd.f32 %v975_v41, %v969_v14  ;;  %v2118_v14 = vld [vmem:[#allocation5 + $0x40] sm:$0xff]   ;;  %v2119_v41 = vld [vmem:[#allocation5 + $0x48] sm:$0xff]  }
 0x457   :  { %v977_v6 = vrot.slane %v976_v15, 4 }
 0x459   :  { %v978_v16 = vadd.f32 %v977_v6, %v976_v15  ;;  %v2121_v15 = vld [vmem:[#allocation5 + $0x58] sm:$0xff]  }
 0x45b   :  { %v979_v17 = vrot.slane %v978_v16, 2 }
 0x45d   :  { %v980_v18 = vadd.f32 %v979_v17, %v978_v16 }
 0x45f   :  { %v981_v21 = vrot.slane %v980_v18, 1 }
 0x461   :  { %v982_v23 = vadd.f32 %v981_v21, %v980_v18 }
 0x463   :  { %v983_v24 = vmul.f32 0.015625, %v982_v23 }
 0x465   :  { %v984_v26 = vadd.f32 1e-05, %v983_v24 }
 0x467   :  { %2138 = vrsqrt.f32 %v984_v26 }
 0x471   :  { %v2139_v31 = vpop.eup %2138 }
 0x472   :  { %v989_v33 = vmul.f32 %v2139_v31, %v957_v57  ;;  %v991_v34 = vmul.f32 %v2139_v31, %v959_v59  ;;  %v986_v37 = vmul.f32 %v2139_v31, %v954_v55  ;;  %v987_v42 = vmul.f32 %v2139_v31, %v955_v40 }
 0x473   :  { %v988_v45 = vmul.f32 %v2139_v31, %v956_v56  ;;  %v990_v38 = vmul.f32 %v2139_v31, %v958_v58  ;;  %v992_v51 = vmul.f32 %v2139_v31, %v960_v61  ;;  %v993_v1 = vmul.f32 %v2139_v31, %v961_v62 }
 0x474   :  { %v1014_v3 = vmul.f32 %v1793_v32, %v991_v34  ;;  %vm994_vm10 = vcmp.gt.f32.partialorder %v986_v37, 0.0  ;;  %vm995_vm11 = vcmp.gt.f32.partialorder %v987_v42, 0.0  ;;  %v1009_v19 = vmul.f32 %v1793_v32, %v986_v37 }
 0x475   :  { %v1010_v20 = vmul.f32 %v1793_v32, %v987_v42  ;;  %vm996_vm12 = vcmp.gt.f32.partialorder %v988_v45, 0.0  ;;  %vm997_vm13 = vcmp.gt.f32.partialorder %v989_v33, 0.0  ;;  %v1011_v4 = vmul.f32 %v1793_v32, %v988_v45 }
 0x476   :  { %v1017_v12 = vsel %vm994_vm10, %v986_v37, %v1009_v19  ;;  %v1012_v36 = vmul.f32 %v1793_v32, %v989_v33  ;;  %vm998_vm14 = vcmp.gt.f32.partialorder %v990_v38, 0.0  ;;  %vm999_vm15 = vcmp.gt.f32.partialorder %v991_v34, 0.0 }
 0x477   :  { %v1018_v57 = vsel %vm995_vm11, %v987_v42, %v1010_v20  ;;  %v1019_v59 = vsel %vm996_vm12, %v988_v45, %v1011_v4  ;;  %v1013_v55 = vmul.f32 %v1793_v32, %v990_v38  ;;  %v1022_v40 = vsel %vm999_vm15, %v991_v34, %v1014_v3 }
 0x478   :  { %v1025_v56 = vpack.c.bf16 %v1018_v57, %v1017_v12  ;;  %v1020_v58 = vsel %vm997_vm13, %v989_v33, %v1012_v36  ;;  %vm1000_vm0 = vcmp.gt.f32.partialorder %v992_v51, 0.0  ;;  %vm1001_vm1 = vcmp.gt.f32.partialorder %v993_v1, 0.0 }
 0x479   :  { %v1026_v61 = vpack.c.bf16 %v1020_v58, %v1019_v59  ;;  %v1021_v62 = vsel %vm998_vm14, %v990_v38, %v1013_v55  ;;  %v1015_v22 = vmul.f32 %v1793_v32, %v992_v51  ;;  %v1016_v28 = vmul.f32 %v1793_v32, %v993_v1 }
 0x47a   :  { %1995 = vmatprep.mubr.bf16.mxu1 %v1025_v56  ;;  %v1027_v60 = vpack.c.bf16 %v1022_v40, %v1021_v62  ;;  %v1455_v34 = vsub.s32 2, %v2602_v27  ;;  %v1350_v57 = vadd.f32 %v2686_v9, %v2619_v48  ;;  %v1351_v48 = vadd.f32 %v2694_v25, %v2621_v49 }
 0x47b   :  { %1996 = vmatmul.mubr.bf16.vlgmr.msra.gmra.mrb[24].mxu1 %v1026_v61  ;;  %v1023_v35 = vsel %vm1000_vm0, %v992_v51, %v1015_v22  ;;  %v1024_v13 = vsel %vm1001_vm1, %v993_v1, %v1016_v28  ;;  %v1353_v61 = vadd.f32 %v2688_v11, %v2617_v46  ;;  %v1354_v49 = vadd.f32 %v2708_v53, %v2633_v7 }
 0x47c   :  { %2020 = vmatpush3.bf16.msra.mxu1 %v2585_v54  ;;  %1999 = vmatprep.mubr.bf16.mxu1 %v1027_v60  ;;  %v1028_v39 = vpack.c.bf16 %v1024_v13, %v1023_v35  ;;  %v2120_v54 = vld [vmem:[#allocation5 + $0x50] sm:$0xff]   ;;  %v1456_v1 = vrot.slane %v2608_v29, %v1455_v34  ;;  %v2773_v27 = vrot.slane %v2613_v30, %v1455_v34 }
 0x47d   :  { %2021 = vmatprep.subr.bf16.mxu1 %v2583_v52  ;;  %v1352_v29 = vadd.f32 %v2682_v63, %v2623_v50  ;;  %v1356_v13 = vadd.f32 %v2698_v43, %v2640_v10 }
 0x480   :  { %2022 = vmatpush3.bf16.msra.mxu1 %v2583_v52  ;;  %v2737_v52 = vld [vmem:[%s2932_s11] ss:$0 sm:$0xff]  ;;  %s2387_s11 = smov [#allocation13]  }
 0x481   :  { %2023 = vmatprep.subr.bf16.mxu1 %v2592_v2  ;;  %s1702_s17 = sshll.u32 %s2387_s11, 4  ;;  %s1703_s17 = int_to_ptr.vmem [resolvable:$true] %s1702_s17 }
 0x482   :  { %s2320_s18 = scalar_lea.vmem %s1703_s17, 1024  ;;  %p2325_p7 = scmp.lt.s32.totalorder %s1703_s17, %s1703_s17 }
 0x483   :  { %2000 = vmatmul.mubr.bf16.gmra.mrb[28].mxu1 %v1028_v39  ;;  %p2321_p6 = scmp.ne.s32.totalorder %s1703_s17, %s2320_s18  ;;  %p2326_p8 = scmp.lt.s32.totalorder %s2320_s18, %s2320_s18 }
 0x484   :  { %2024 = vmatpush3.bf16.msra.mxu1 %v2592_v2  ;;  %2027 = vmatprep.mubr.msk.bf16.mxu1 %vm693_vm8, %v2118_v14 }
 0x485   :  { %2025 = vmatprep.subr.bf16.mxu1 %v2590_v0  ;;  %p2327_p9 = por %p2326_p8, %p2325_p7 }
 0x487   :  { %p2328_p10 = pnand %p2327_p9, %p2321_p6 }
 0x488   :  { %2026 = vmatpush3.bf16.msra.mxu1 %v2590_v0 }
 0x48b   :  { %2028 = vmatmul.mubr.msk.bf16.vlgmr.msra.gmra.mrb[32].mxu1 %vm693_vm8, %v2119_v41 }
 0x48c   :  { %2031 = vmatprep.mubr.msk.bf16.mxu1 %vm693_vm8, %v2120_v54 }
 0x493   :  { %2032 = vmatmul.mubr.msk.bf16.gmra.mrb[36].mxu1 %vm693_vm8, %v2121_v15 }
 0x54e   :  { %v1997_v2 = vpop.f32.mrb[24].mxu1 }
 0x54f   :  { %v2740_v6 = vadd.f32 %v1997_v2, %v2737_v52  ;;  %v1134_v16 = vpop.f32.mrb[25].mxu1 }
 0x550   :  { %v1998_v17 = vpop.f32.mrb[26].mxu1  ;;  %v2743_v0 = vadd.f32 %v2737_v52, %v1134_v16 }
 0x551   :  { %v2746_v18 = vadd.f32 %v1998_v17, %v2737_v52  ;;  %v1137_v21 = vpop.f32.mrb[27].mxu1  ;;  %v1167_v23 = vmul.f32 %v2740_v6, %v2740_v6 }
 0x552   :  { %v2753_v26 = vadd.f32 %v2737_v52, %v1137_v21  ;;  %v1165_v31 = vmul.f32 %v2743_v0, %v2743_v0 }
 0x553   :  { %1177 = vadd.xlane.f32.xlu0 %v1167_v23  ;;  %v1168_v24 = vmul.f32 %v2746_v18, %v2746_v18 }
 0x554   :  { %v1166_v38 = vmul.f32 %v2753_v26, %v2753_v26 }
 0x555   :  { %1179 = vadd.xlane.f32.xlu1 %v1168_v24 }
 0x556   :  { %v2001_v32 = vpop.f32.mrb[28].mxu1 }
 0x557   :  { %v1150_v33 = vpop.f32.mrb[29].mxu1  ;;  %1173 = vadd.xlane.f32.xlu0 %v1165_v31  ;;  %v2759_v42 = vadd.f32 %v2001_v32, %v2737_v52 }
 0x558   :  { %v2002_v37 = vpop.f32.mrb[30].mxu1  ;;  %v2770_v19 = vadd.f32 %v2737_v52, %v1150_v33 }
 0x559   :  { %v1153_v45 = vpop.f32.mrb[31].mxu1  ;;  %v1171_v20 = vmul.f32 %v2759_v42, %v2759_v42  ;;  %v2809_v17 = vadd.f32 %v2002_v37, %v2737_v52 }
 0x55a   :  { %v2764_v51 = vadd.f32 %v2737_v52, %v1153_v45  ;;  %v1169_v58 = vmul.f32 %v2770_v19, %v2770_v19 }
 0x55b   :  { %1175 = vadd.xlane.f32.xlu0 %v1166_v38 }
 0x55c   :  { %v1170_v3 = vmul.f32 %v2764_v51, %v2764_v51 }
 0x55e   :  { %v2029_v4 = vpop.f32.mrb[32].mxu1  ;;  %1183 = vadd.xlane.f32.xlu1 %v1170_v3 }
 0x55f   :  { %v1532_v12 = vadd.f32 %v2029_v4, %v1456_v1  ;;  %v1523_v36 = vpop.f32.mrb[33].mxu1  ;;  %1185 = vadd.xlane.f32.xlu0 %v1171_v20 }
 0x560   :  { %v1524_v59 = vadd.f32 %v1523_v36, %v1456_v1  ;;  %v2030_v55 = vpop.f32.mrb[34].mxu1 }
 0x561   :  { %vm1556_vm8 = vcmp.gt.f32.partialorder %v1532_v12, 0.0  ;;  %v1568_v30 = vmul.f32 %v2773_v27, %v1532_v12  ;;  %v1535_v40 = vadd.f32 %v2030_v55, %v1456_v1  ;;  %v1526_v56 = vpop.f32.mrb[35].mxu1  ;;  %v1355_v55 = vadd.f32 %v2704_v47, %v2635_v8 }
 0x562   :  { %vm1554_vm2 = vcmp.gt.f32.partialorder %v1524_v59, 0.0  ;;  %v1566_v62 = vmul.f32 %v2773_v27, %v1524_v59  ;;  %v1527_v50 = vadd.f32 %v1526_v56, %v1456_v1 }
 0x563   :  { %vm1557_vm3 = vcmp.gt.f32.partialorder %v1535_v40, 0.0  ;;  %v1569_v22 = vmul.f32 %v2773_v27, %v1535_v40  ;;  %1181 = vadd.xlane.f32.xlu0 %v1169_v58  ;;  %v2790_v28 = vsel %vm1556_vm8, %v1532_v12, %v1568_v30 }
 0x564   :  { %vm1555_vm4 = vcmp.gt.f32.partialorder %v1527_v50, 0.0  ;;  %v1567_v60 = vmul.f32 %v2773_v27, %v1527_v50  ;;  %v1584_v35 = vadd.f32 %v2790_v28, %v1352_v29  ;;  %v1592_v46 = vmul.f32 %v2790_v28, %v2790_v28 }
 0x565   :  { %v2800_v39 = vsel %vm1557_vm3, %v1535_v40, %v1569_v22  ;;  %v2802_v14 = vsel %vm1554_vm2, %v1524_v59, %v1566_v62  ;;  %v1357_v29 = vadd.f32 %v2700_v44, %v2631_v5  ;;  %v1172_v5 = vmul.f32 %v2809_v17, %v2809_v17 }
 0x566   :  { %v2033_v41 = vpop.f32.mrb[36].mxu1  ;;  %v1678_v54 = vmul.f32 0.33333334, %v1584_v35  ;;  %v1585_v15 = vadd.f32 %v2800_v39, %v1353_v61  ;;  %v1593_v2 = vmul.f32 %v2800_v39, %v2800_v39  ;;  %v1582_v16 = vadd.f32 %v2802_v14, %v1350_v57 }
 0x567   :  { %v1548_v10 = vadd.f32 %v2033_v41, %v1456_v1  ;;  %v1539_v21 = vpop.f32.mrb[37].mxu1  ;;  %1602 = vadd.xlane.f32.xlu0 %v1592_v46  ;;  %v1590_v7 = vmul.f32 %v2802_v14, %v2802_v14  ;;  %v2814_v23 = vsel %vm1555_vm4, %v1527_v50, %v1567_v60  ;;  %v1365_v35 = vmul.f32 %v2700_v44, %v2700_v44 }
 0x568   :  { %v1540_v24 = vadd.f32 %v1539_v21, %v1456_v1  ;;  %1686 = vst [vmem:[#allocation13 + $0x10] sm:$0xff] %v1678_v54  ;;  %v2034_v31 = vpop.f32.mrb[38].mxu1  ;;  %v1679_v32 = vmul.f32 0.33333334, %v1585_v15  ;;  %1604 = vadd.xlane.f32.xlu1 %v1593_v2  ;;  %v1676_v33 = vmul.f32 0.33333334, %v1582_v16  ;;  %v1583_v34 = vadd.f32 %v2814_v23, %v1351_v48  ;;  %v1373_v54 = vpop.xlane.xlu0 %1372 }
 0x569   :  { %vm1560_vm5 = vcmp.gt.f32.partialorder %v1548_v10, 0.0  ;;  %v1572_v52 = vmul.f32 %v2773_v27, %v1548_v10  ;;  %v1551_v37 = vadd.f32 %v2034_v31, %v1456_v1  ;;  %v1542_v45 = vpop.f32.mrb[39].mxu1  ;;  %v1591_v38 = vmul.f32 %v2814_v23, %v2814_v23 }
 0x56a   :  { %vm1558_vm6 = vcmp.gt.f32.partialorder %v1540_v24, 0.0  ;;  %v1570_v3 = vmul.f32 %v2773_v27, %v1540_v24  ;;  %1687 = vst [vmem:[#allocation13 + $0x18] sm:$0xff] %v1679_v32  ;;  %v1543_v20 = vadd.f32 %v1542_v45, %v1456_v1  ;;  %1684 = vst [vmem:[#allocation13] sm:$0xff] %v1676_v33  ;;  %v1677_v4 = vmul.f32 0.33333334, %v1583_v34 }
 0x56b   :  { %vm1561_vm7 = vcmp.gt.f32.partialorder %v1551_v37, 0.0  ;;  %v1573_v12 = vmul.f32 %v2773_v27, %v1551_v37  ;;  %1598 = vadd.xlane.f32.xlu0 %v1590_v7  ;;  %v2822_v36 = vsel %vm1560_vm5, %v1548_v10, %v1572_v52  ;;  %v1385_v33 = vmax.f32 %v1373_v54, 1e-24 }
 0x56c   :  { %vm1559_vm9 = vcmp.gt.f32.partialorder %v1543_v20, 0.0  ;;  %v1571_v57 = vmul.f32 %v2773_v27, %v1543_v20  ;;  %1685 = vst [vmem:[#allocation13 + $0x8] sm:$0xff] %v1677_v4  ;;  %1600 = vadd.xlane.f32.xlu1 %v1591_v38  ;;  %v2827_v59 = vsel %vm1558_vm6, %v1540_v24, %v1570_v3  ;;  %v1588_v1 = vadd.f32 %v2822_v36, %v1356_v13  ;;  %v1371_v13 = vpop.xlane.xlu1 %1370  ;;  %v2853_v2 = vpop.xlane.xlu0 %1376 }
 0x56d   :  { %v1586_v30 = vadd.f32 %v2827_v59, %v1354_v49  ;;  %v1594_v40 = vmul.f32 %v2827_v59, %v2827_v59  ;;  %v2835_v56 = vsel %vm1561_vm7, %v1551_v37, %v1573_v12  ;;  %v1596_v48 = vmul.f32 %v2822_v36, %v2822_v36 }
 0x56e   :  { %v1682_v27 = vmul.f32 0.33333334, %v1588_v1  ;;  %v2839_v58 = vsel %vm1559_vm9, %v1543_v20, %v1571_v57  ;;  %v1589_v61 = vadd.f32 %v2835_v56, %v1357_v29  ;;  %v1597_v46 = vmul.f32 %v2835_v56, %v2835_v56 }
 0x56f   :  { %v1680_v62 = vmul.f32 0.33333334, %v1586_v30  ;;  %1606 = vadd.xlane.f32.xlu0 %v1594_v40  ;;  %v1587_v50 = vadd.f32 %v2839_v58, %v1355_v55  ;;  %v1595_v60 = vmul.f32 %v2839_v58, %v2839_v58  ;;  %v1384_v16 = vmax.f32 %v1371_v13, 1e-24 }
 0x570   :  { %1187 = vadd.xlane.f32.xlu1 %v1172_v5  ;;  %1690 = vst [vmem:[#allocation13 + $0x30] sm:$0xff] %v1682_v27  ;;  %v1683_v8 = vmul.f32 0.33333334, %v1589_v61  ;;  %v1367_v49 = vpop.xlane.xlu1 %1366 }
 0x571   :  { %1688 = vst [vmem:[#allocation13 + $0x20] sm:$0xff] %v1680_v62  ;;  %v1681_v22 = vmul.f32 0.33333334, %v1587_v50  ;;  %2140 = vrsqrt.f32 %v1384_v16  ;;  %v1382_v7 = vmax.f32 %v1367_v49, 1e-24 }
 0x572   :  { %1691 = vst [vmem:[#allocation13 + $0x38] sm:$0xff] %v1683_v8 }
 0x573   :  { %1610 = vadd.xlane.f32.xlu0 %v1596_v48  ;;  %1689 = vst [vmem:[#allocation13 + $0x28] sm:$0xff] %v1681_v22 }
 0x574   :  { %1608 = vadd.xlane.f32.xlu1 %v1595_v60  ;;  %v1369_v41 = vpop.xlane.xlu1 %1368 }
 0x575   :  { %v1383_v52 = vmax.f32 %v1369_v41, 1e-24 }
 0x577   :  { %1380 = vadd.xlane.f32.xlu0 %v1365_v35 }
 0x578   :  { %1612 = vadd.xlane.f32.xlu1 %v1597_v46  ;;  %v2851_v15 = vpop.xlane.xlu1 %1378 }
 0x57b   :  { %v2141_v3 = vpop.eup %2140 }
 0x57c   :  { %v1375_v10 = vpop.xlane.xlu1 %1374  ;;  %v1400_v57 = vmul.f32 %v2141_v3, %v2682_v63 }
 0x57d   :  { %v1386_v12 = vmax.f32 %v1375_v10, 1e-24  ;;  %v1387_v10 = vmax.f32 %v2853_v2, 1e-24 }
 0x5e0   :  { %v1178_v21 = vpop.xlane.xlu0 %1177 }
 0x5e1   :  { %v1191_v24 = vmax.f32 %v1178_v21, 1e-24 }
 0x5e2   :  { %v1180_v31 = vpop.xlane.xlu1 %1179 }
 0x5e3   :  { %2142 = vrsqrt.f32 %v1191_v24  ;;  %v1192_v32 = vmax.f32 %v1180_v31, 1e-24 }
 0x5e4   :  { %v1174_v34 = vpop.xlane.xlu0 %1173  ;;  %2144 = vrsqrt.f32 %v1382_v7 }
 0x5e5   :  { %v1189_v37 = vmax.f32 %v1174_v34, 1e-24  ;;  %2146 = vrsqrt.f32 %v1192_v32  ;;  %v1388_v32 = vmax.f32 %v2851_v15, 1e-24 }
 0x5e7   :  { %2148 = vrsqrt.f32 %v1189_v37 }
 0x5e8   :  { %2150 = vrsqrt.f32 %v1385_v33  ;;  %v1176_v45 = vpop.xlane.xlu0 %1175 }
 0x5e9   :  { %2152 = vrsqrt.f32 %v1383_v52  ;;  %v1190_v38 = vmax.f32 %v1176_v45, 1e-24 }
 0x5eb   :  { %2154 = vrsqrt.f32 %v1190_v38  ;;  %v1184_v27 = vpop.xlane.xlu1 %1183 }
 0x5ec   :  { %v1186_v20 = vpop.xlane.xlu0 %1185  ;;  %2156 = vrsqrt.f32 %v1386_v12  ;;  %v1194_v49 = vmax.f32 %v1184_v27, 1e-24 }
 0x5ed   :  { %v2143_v4 = vpop.eup %2142 }
 0x5ee   :  { %v2856_v29 = vmul.f32 %v2143_v4, %v2740_v6  ;;  %v2145_v1 = vpop.eup %2144 }
 0x5ef   :  { %v2147_v55 = vpop.eup %2146  ;;  %v1398_v8 = vmul.f32 %v2145_v1, %v2686_v9 }
 0x5f0   :  { %v1182_v30 = vpop.xlane.xlu0 %1181  ;;  %v1408_v40 = vmul.f32 %v1400_v57, %v2856_v29  ;;  %v2866_v22 = vmul.f32 %v2147_v55, %v2746_v18 }
 0x5f1   :  { %v2149_v5 = vpop.eup %2148  ;;  %v1193_v61 = vmax.f32 %v1182_v30, 1e-24 }
 0x5f2   :  { %v2151_v62 = vpop.eup %2150  ;;  %1418 = vadd.xlane.f32.xlu0 %v1408_v40  ;;  %v2861_v50 = vmul.f32 %v2149_v5, %v2743_v0 }
 0x5f3   :  { %v2153_v6 = vpop.eup %2152  ;;  %2158 = vrsqrt.f32 %v1193_v61  ;;  %v1401_v13 = vmul.f32 %v2151_v62, %v2688_v11 }
 0x5f4   :  { %v1603_v48 = vpop.xlane.xlu0 %1602  ;;  %v1406_v63 = vmul.f32 %v1398_v8, %v2861_v50  ;;  %v1399_v9 = vmul.f32 %v2153_v6, %v2694_v25 }
 0x5f5   :  { %v2155_v60 = vpop.eup %2154  ;;  %v1616_v35 = vmax.f32 %v1603_v48, 1e-24  ;;  %v1605_v46 = vpop.xlane.xlu1 %1604  ;;  %v1409_v16 = vmul.f32 %v1401_v13, %v2866_v22 }
 0x5f6   :  { %v1617_v41 = vmax.f32 %v1605_v46, 1e-24  ;;  %1414 = vadd.xlane.f32.xlu0 %v1406_v63  ;;  %v2870_v0 = vmul.f32 %v2155_v60, %v2753_v26  ;;  %v2157_v24 = vpop.eup %2156  ;;  %v1195_v26 = vmax.f32 %v1186_v20, 1e-24 }
 0x5f7   :  { %2160 = vrsqrt.f32 %v1616_v35  ;;  %v1402_v2 = vmul.f32 %v2157_v24, %v2708_v53 }
 0x5f8   :  { %2162 = vrsqrt.f32 %v1617_v41  ;;  %v1599_v54 = vpop.xlane.xlu0 %1598  ;;  %v1407_v18 = vmul.f32 %v1399_v9, %v2870_v0 }
 0x5f9   :  { %v1614_v21 = vmax.f32 %v1599_v54, 1e-24  ;;  %v1601_v7 = vpop.xlane.xlu1 %1600  ;;  %2164 = vrsqrt.f32 %v1194_v49 }
 0x5fa   :  { %v1615_v11 = vmax.f32 %v1601_v7, 1e-24  ;;  %1420 = vadd.xlane.f32.xlu0 %v1409_v16  ;;  %1416 = vadd.xlane.f32.xlu1 %v1407_v18 }
 0x5fb   :  { %2166 = vrsqrt.f32 %v1614_v21 }
 0x5fc   :  { %2168 = vrsqrt.f32 %v1615_v11  ;;  %v1607_v25 = vpop.xlane.xlu0 %1606 }
 0x5fd   :  { %v2159_v31 = vpop.eup %2158  ;;  %2170 = vrsqrt.f32 %v1387_v10  ;;  %v1188_v33 = vpop.xlane.xlu1 %1187  ;;  %v1618_v34 = vmax.f32 %v1607_v25, 1e-24 }
 0x5fe   :  { %v1209_v52 = vmul.f32 %v2159_v31, %v2770_v19  ;;  %2172 = vrsqrt.f32 %v1195_v26  ;;  %v1196_v3 = vmax.f32 %v1188_v33, 1e-24 }
 0x5ff   :  { %2174 = vrsqrt.f32 %v1388_v32 }
 0x600   :  { %v1611_v37 = vpop.xlane.xlu0 %1610  ;;  %v1410_v45 = vmul.f32 %v1402_v2, %v1209_v52  ;;  %2176 = vrsqrt.f32 %v1618_v34 }
 0x601   :  { %v2161_v38 = vpop.eup %2160  ;;  %v1620_v20 = vmax.f32 %v1611_v37, 1e-24  ;;  %v1609_v4 = vpop.xlane.xlu1 %1608 }
 0x602   :  { %v2163_v12 = vpop.eup %2162  ;;  %v1619_v57 = vmax.f32 %v1609_v4, 1e-24  ;;  %1422 = vadd.xlane.f32.xlu0 %v1410_v45  ;;  %v1632_v15 = vmul.f32 %v2161_v38, %v2790_v28 }
 0x603   :  { %2178 = vrsqrt.f32 %v1620_v20  ;;  %v2165_v1 = vpop.eup %2164  ;;  %v1633_v53 = vmul.f32 %v2163_v12, %v2800_v39 }
 0x604   :  { %v1381_v55 = vpop.xlane.xlu0 %1380  ;;  %v1640_v19 = vmul.f32 %v1632_v15, %v2856_v29  ;;  %2180 = vrsqrt.f32 %v1196_v3  ;;  %v1210_v39 = vmul.f32 %v2165_v1, %v2764_v51 }
 0x605   :  { %v2167_v30 = vpop.eup %2166  ;;  %v1389_v40 = vmax.f32 %v1381_v55, 1e-24  ;;  %v1613_v5 = vpop.xlane.xlu1 %1612  ;;  %2182 = vrsqrt.f32 %v1619_v57  ;;  %v1641_v28 = vmul.f32 %v1633_v53, %v2866_v22 }
 0x606   :  { %v2169_v27 = vpop.eup %2168  ;;  %1650 = vadd.xlane.f32.xlu1 %v1640_v19  ;;  %v1630_v61 = vmul.f32 %v2167_v30, %v2802_v14  ;;  %v1621_v8 = vmax.f32 %v1613_v5, 1e-24 }
 0x607   :  { %v2171_v62 = vpop.eup %2170  ;;  %2184 = vrsqrt.f32 %v1389_v40  ;;  %v1631_v29 = vmul.f32 %v2169_v27, %v2814_v23 }
 0x608   :  { %v1638_v6 = vmul.f32 %v1630_v61, %v2861_v50  ;;  %v2173_v48 = vpop.eup %2172  ;;  %v1403_v63 = vmul.f32 %v2171_v62, %v2704_v47  ;;  %2186 = vrsqrt.f32 %v1621_v8 }
 0x609   :  { %v2175_v60 = vpop.eup %2174  ;;  %v1639_v14 = vmul.f32 %v1631_v29, %v2870_v0  ;;  %v1211_v13 = vmul.f32 %v2173_v48, %v2759_v42 }
 0x60a   :  { %1652 = vadd.xlane.f32.xlu1 %v1641_v28  ;;  %1646 = vadd.xlane.f32.xlu0 %v1638_v6  ;;  %v2177_v35 = vpop.eup %2176  ;;  %v1411_v46 = vmul.f32 %v1403_v63, %v1210_v39  ;;  %v1404_v23 = vmul.f32 %v2175_v60, %v2698_v43 }
 0x60b   :  { %v1634_v47 = vmul.f32 %v2177_v35, %v2827_v59 }
 0x60c   :  { %v1412_v41 = vmul.f32 %v1404_v23, %v1211_v13 }
 0x60d   :  { %v2179_v22 = vpop.eup %2178  ;;  %v1642_v16 = vmul.f32 %v1634_v47, %v1209_v52 }
 0x60e   :  { %1648 = vadd.xlane.f32.xlu1 %v1639_v14  ;;  %1424 = vadd.xlane.f32.xlu0 %v1411_v46  ;;  %v1636_v51 = vmul.f32 %v2179_v22, %v2822_v36  ;;  %v2181_v50 = vpop.eup %2180 }
 0x60f   :  { %v2183_v49 = vpop.eup %2182  ;;  %v1212_v0 = vmul.f32 %v2181_v50, %v2809_v17 }
 0x610   :  { %v1644_v9 = vmul.f32 %v1636_v51, %v1211_v13  ;;  %v1635_v10 = vmul.f32 %v2183_v49, %v2839_v58 }
 0x611   :  { %v2185_v54 = vpop.eup %2184 }
 0x612   :  { %1426 = vadd.xlane.f32.xlu0 %v1412_v41  ;;  %1658 = vadd.xlane.f32.xlu1 %v1644_v9  ;;  %v1405_v42 = vmul.f32 %v2185_v54, %v2700_v44  ;;  %v2187_v43 = vpop.eup %2186  ;;  %v1643_v36 = vmul.f32 %v1635_v10, %v1210_v39 }
 0x613   :  { %v1637_v21 = vmul.f32 %v2187_v43, %v2835_v56 }
 0x614   :  { %v1413_v18 = vmul.f32 %v1405_v42, %v1212_v0 }
 0x615   :  { %v1645_v7 = vmul.f32 %v1637_v21, %v1212_v0 }
 0x616   :  { %1654 = vadd.xlane.f32.xlu1 %v1642_v16  ;;  %1428 = vadd.xlane.f32.xlu0 %v1413_v18 }
 0x61a   :  { %1656 = vadd.xlane.f32.xlu1 %v1643_v36 }
 0x61e   :  { %1660 = vadd.xlane.f32.xlu1 %v1645_v7 }
 0x61f   :  { %2331 = shalt.err (!%p2328_p10)
}
 0x620   :  { %s2332_s24 = scalar_lea.hbm %s2933_s12, 1024 }
 0x621   :  { %p2333_p11 = scmp.ne.s32.totalorder %s2933_s12, %s2332_s24  ;;  %p2336_p12 = scmp.lt.u32.totalorder %s2332_s24, %s2933_s12 }
 0x623   :  { %p2338_p13 = pnand %p2336_p12, %p2333_p11 }
 0x625   :  { %2341 = shalt.err (!%p2338_p13)
}
 0x626   :  { %s2388_s0 = smov 128   ;;  %s2389_s22 = smov 8   ;;  %vm1695_vm10 = vcmask 0  }
 0x627   :  { %1708 = dma.vmem_to_hbm [thread:$0]  %s1703_s17, 1024, %s2933_s12, [#allocation4], %s2388_s0, %s2388_s0, %s2389_s22  }
 0x628   :  { %s2390_s12 = smov [#allocation14]  }
 0x629   :  { %s1715_s4 = sshll.u32 %s2390_s12, 4  ;;  %s1716_s4 = int_to_ptr.vmem [resolvable:$true] %s1715_s4 }
 0x62a   :  { %s2342_s7 = scalar_lea.vmem %s1716_s4, 16  ;;  %s2346_s14 = scalar_lea.vmem %s1716_s4, 32 }
 0x62b   :  { %p2343_p0 = scmp.ne.s32.totalorder %s1716_s4, %s2342_s7  ;;  %p2347_p1 = scmp.lt.s32.totalorder %s1716_s4, %s1716_s4 }
 0x62c   :  { %p2348_p2 = scmp.lt.s32.totalorder %s2346_s14, %s2342_s7 }
 0x62e   :  { %p2349_p3 = por %p2348_p2, %p2347_p1 }
 0x630   :  { %p2350_p4 = pnand %p2349_p3, %p2343_p0 }
 0x67f   :  { %v1419_v44 = vpop.xlane.xlu0 %1418 }
 0x683   :  { %v1415_v17 = vpop.xlane.xlu0 %1414 }
 0x687   :  { %v1417_v59 = vpop.xlane.xlu1 %1416  ;;  %v1421_v56 = vpop.xlane.xlu0 %1420 }
 0x688   :  { %v1430_v24 = vadd.f32 %v1417_v59, %v1415_v17 }
 0x68a   :  { %v1431_v31 = vadd.f32 %v1430_v24, %v1419_v44 }
 0x68c   :  { %v1432_v34 = vadd.f32 %v1431_v31, %v1421_v56 }
 0x68f   :  { %v1423_v58 = vpop.xlane.xlu0 %1422 }
 0x690   :  { %v1433_v2 = vadd.f32 %v1432_v34, %v1423_v58 }
 0x693   :  { %v1651_v11 = vpop.xlane.xlu1 %1650 }
 0x697   :  { %v1653_v26 = vpop.xlane.xlu1 %1652  ;;  %v1647_v25 = vpop.xlane.xlu0 %1646 }
 0x69b   :  { %v1649_v32 = vpop.xlane.xlu1 %1648  ;;  %v1425_v33 = vpop.xlane.xlu0 %1424 }
 0x69c   :  { %v1662_v52 = vadd.f32 %v1649_v32, %v1647_v25  ;;  %v1434_v3 = vadd.f32 %v1433_v2, %v1425_v33 }
 0x69e   :  { %v1663_v38 = vadd.f32 %v1662_v52, %v1651_v11 }
 0x69f   :  { %v1659_v37 = vpop.xlane.xlu1 %1658  ;;  %v1427_v45 = vpop.xlane.xlu0 %1426 }
 0x6a0   :  { %v1435_v20 = vadd.f32 %v1434_v3, %v1427_v45  ;;  %v1664_v57 = vadd.f32 %v1663_v38, %v1653_v26 }
 0x6a3   :  { %v1655_v4 = vpop.xlane.xlu1 %1654  ;;  %v1429_v12 = vpop.xlane.xlu0 %1428 }
 0x6a4   :  { %v1436_v15 = vadd.f32 %v1435_v20, %v1429_v12  ;;  %v1665_v1 = vadd.f32 %v1664_v57, %v1655_v4 }
 0x6a6   :  { %v1437_v55 = vrot.slane %v1436_v15, 4 }
 0x6a7   :  { %v1657_v19 = vpop.xlane.xlu1 %1656 }
 0x6a8   :  { %v1438_v53 = vadd.f32 %v1437_v55, %v1436_v15  ;;  %v1666_v30 = vadd.f32 %v1665_v1, %v1657_v19 }
 0x6aa   :  { %v1667_v40 = vadd.f32 %v1666_v30, %v1659_v37  ;;  %v1439_v27 = vrot.slane %v1438_v53, 2 }
 0x6ab   :  { %v1661_v5 = vpop.xlane.xlu1 %1660 }
 0x6ac   :  { %v1668_v61 = vadd.f32 %v1667_v40, %v1661_v5  ;;  %v1440_v8 = vadd.f32 %v1439_v27, %v1438_v53 }
 0x6ae   :  { %v1669_v62 = vrot.slane %v1668_v61, 4  ;;  %v1441_v29 = vrot.slane %v1440_v8, 1 }
 0x6b0   :  { %v1670_v28 = vadd.f32 %v1669_v62, %v1668_v61  ;;  %v1442_v63 = vadd.f32 %v1441_v29, %v1440_v8 }
 0x6b2   :  { %v1671_v6 = vrot.slane %v1670_v28, 2 }
 0x6b4   :  { %v1672_v39 = vadd.f32 %v1671_v6, %v1670_v28 }
 0x6b6   :  { %v1673_v48 = vrot.slane %v1672_v39, 1 }
 0x6b8   :  { %v1674_v60 = vadd.f32 %v1673_v48, %v1672_v39 }
 0x6ba   :  { %v1675_v35 = vadd.f32 %v1674_v60, %v1442_v63 }
 0x6bc   :  { %v1692_v14 = vmul.f32 2.0, %v1675_v35 }
 0x6be   :  { %v1693_v46 = vmul.f32 0.0078125, %v1692_v14 }
 0x6c0   :  { %v1694_v13 = vsub.f32 2.0, %v1693_v46 }
 0x6c2   :  { %1696 = vst.msk [vmem:[#allocation14] sm:$0x1] %vm1695_vm10, %v1694_v13 }
 0x6c3   :  { %2353 = shalt.err (!%p2350_p4)
}
 0x6c4   :  { %s2354_s3 = scalar_lea.hbm %s2934_s13, 16 }
 0x6c5   :  { %p2355_p5 = scmp.ne.s32.totalorder %s2934_s13, %s2354_s3  ;;  %p2358_p6 = scmp.lt.u32.totalorder %s2354_s3, %s2934_s13 }
 0x6c7   :  { %p2360_p7 = pnand %p2358_p6, %p2355_p5 }
 0x6c9   :  { %2363 = shalt.err (!%p2360_p7)
}
 0x6ca   :  { %1718 = dma.vmem_to_hbm [thread:$0]  %s1716_s4, 16, %s2934_s13, [#allocation15]  }
 0x6cb   :  { %2372 = dma.done.wait [#allocation4], 1024  }
 0x6cc   :  { %2373 = vsyncadd [#allocation4], 4294966272 }
 0x6cd   :  { %2374 = dma.done.wait [#allocation15], 16  }
 0x6ce   :  { %2375 = vsyncadd [#allocation15], 4294967280 }
 0x6cf   :  { %1725 = vsyncpa [#allocation3], 1 }
 0x6d0   :  { %1726 = vsyncpa [#allocation6], 1 }
 0x6d1   :  { %1727 = vsyncpa [#allocation9], 1 }
 0x6d2   :  { %1728 = vsyncpa [#allocation12], 1 }
 0x6d3   :  { %1729 = vsyncpa [#allocation4], 1 }
 0x6d4   :  { %1730 = vsyncpa [#allocation15], 1 }

</bundles_post_ra>
